<compile_context>
chip_gen: v7x
topology: tpu7x:2x2x1
jax: 0.10.0
libtpu: 0.0.40
codegen_flags: <defaults>
</compile_context>

<pallas_src>
import functools
import math

import jax
import jax.numpy as jnp
from jax.experimental import pallas as pl
from jax.experimental.pallas import tpu as pltpu

# ---------------- small synthetic "bert-base"-style config ----------------
VOCAB = 128
HIDDEN = 32
NUM_LAYERS = 2
NUM_HEADS = 4
HEAD_DIM = HIDDEN // NUM_HEADS
INTERMEDIATE = 64
MAX_POS = 32
TYPE_VOCAB = 2
LN_EPS = 1e-12

# packed per-layer small-vector slab layout
(ROW_QKV_B, ROW_AO_B, ROW_LN1_G, ROW_LN1_B,
 ROW_I_B, ROW_O_B, ROW_LN2_G, ROW_LN2_B) = range(8)
VEC_ROWS = 8
VEC_COLS = 128      # lane-dense padding for the packed slab
OUT_LANES = 128     # lane-dense padded output width


def _layernorm(x, gamma, beta):
    mean = jnp.mean(x, axis=-1, keepdims=True)
    c = x - mean
    var = jnp.mean(c * c, axis=-1, keepdims=True)
    return c * jax.lax.rsqrt(var + LN_EPS) * gamma + beta


# ------------- fused kernel: encoder stack -> pooler -> regression ----------
def _fused_bert_kernel(emb_ref, bias_ref, qkv_w_ref, ao_w_ref, i_w_ref, o_w_ref,
                       vec_ref, pool_w_ref, pool_b_ref, reg_w_ref, reg_b_ref,
                       out_ref, x_scr, *, B, S):
    H, NH, HD, I = HIDDEN, NUM_HEADS, HEAD_DIM, INTERMEDIATE
    l = pl.program_id(0)
    n_layers = pl.num_programs(0)

    # grid step 0: seed the resident activation slab with the embeddings
    # (embedding gather + LayerNorm already done in the wrapper).
    @pl.when(l == 0)
    def _():
        x_scr[...] = emb_ref[...]

    x = x_scr[...]                                   # (B*S, H) f32 residual stream

    # single DMA'd slab of this layer's small vectors
    vec = vec_ref[0]                                 # (8, 128) f32
    qkv_b = vec[ROW_QKV_B:ROW_QKV_B + 1, :3 * H]
    ao_b = vec[ROW_AO_B:ROW_AO_B + 1, :H]
    ln1_g = vec[ROW_LN1_G:ROW_LN1_G + 1, :H]
    ln1_b = vec[ROW_LN1_B:ROW_LN1_B + 1, :H]
    i_b = vec[ROW_I_B:ROW_I_B + 1, :I]
    o_b = vec[ROW_O_B:ROW_O_B + 1, :H]
    ln2_g = vec[ROW_LN2_G:ROW_LN2_G + 1, :H]
    ln2_b = vec[ROW_LN2_B:ROW_LN2_B + 1, :H]

    # --- self-attention: fused QKV projection (bf16 MXU, f32 accumulation) ---
    # 1/sqrt(HD) is pre-folded into the Q columns of qkv_w / qkv_b.
    qkv = jnp.dot(x.astype(jnp.bfloat16), qkv_w_ref[0],
                  preferred_element_type=jnp.float32) + qkv_b        # (B*S, 3H)

    # hoist the additive mask broadcast once per layer (not once per head)
    abias = jnp.broadcast_to(bias_ref[...], (B, S, S))               # (B, S, S)

    ctx_heads = []
    for h in range(NH):                              # short unrolled head loop
        q = qkv[:, h * HD:(h + 1) * HD].reshape(B, S, HD).astype(jnp.bfloat16)
        k = qkv[:, H + h * HD:H + (h + 1) * HD].reshape(B, S, HD).astype(jnp.bfloat16)
        v = qkv[:, 2 * H + h * HD:2 * H + (h + 1) * HD].reshape(B, S, HD).astype(jnp.bfloat16)
        s = jnp.einsum("bqd,bkd->bqk", q, k,
                       preferred_element_type=jnp.float32) + abias
        s = s - jnp.max(s, axis=-1, keepdims=True)
        p = jnp.exp(s)
        p = p * pl.reciprocal(jnp.sum(p, axis=-1, keepdims=True), approx=True)
        ctx_heads.append(
            jnp.einsum("bqk,bkd->bqd", p.astype(jnp.bfloat16), v,
                       preferred_element_type=jnp.float32).reshape(B * S, HD))
    ctx = jnp.concatenate(ctx_heads, axis=-1)                        # (B*S, H)

    attn_out = jnp.dot(ctx.astype(jnp.bfloat16), ao_w_ref[0],
                       preferred_element_type=jnp.float32) + ao_b
    x1 = _layernorm(attn_out + x, ln1_g, ln1_b)

    # --- feed-forward (exact erf-GELU, matching HF BERT) ---------------------
    inter = jnp.dot(x1.astype(jnp.bfloat16), i_w_ref[0],
                    preferred_element_type=jnp.float32) + i_b
    inter = 0.5 * inter * (1.0 + jax.lax.erf(inter * 0.7071067811865476))
    ff = jnp.dot(inter.astype(jnp.bfloat16), o_w_ref[0],
                 preferred_element_type=jnp.float32) + o_b
    x2 = _layernorm(ff + x1, ln2_g, ln2_b)

    # writeback only if another layer will consume it (skip dead final store)
    @pl.when(l < n_layers - 1)
    def _():
        x_scr[...] = x2

    # --- last grid step: pooler (tanh on CLS) + regression head --------------
    @pl.when(l == n_layers - 1)
    def _():
        # gather the B CLS rows directly from the live value (rows 0, S, 2S, ...),
        # avoiding a full (B*S, H) reshape relayout.
        cls = jnp.concatenate([x2[b * S:b * S + 1, :] for b in range(B)], axis=0)
        pooled = jnp.tanh(
            jnp.dot(cls.astype(jnp.bfloat16), pool_w_ref[...],
                    preferred_element_type=jnp.float32) + pool_b_ref[...])
        # regression head as a VPU/XLU row reduction (no N=1 MXU matmul)
        val = (jnp.sum(pooled * reg_w_ref[...], axis=-1, keepdims=True)
               + reg_b_ref[...])                                     # (B, 1)
        out_ref[...] = jnp.broadcast_to(val, (B, OUT_LANES))         # lane-dense store


# ---------------- params ----------------
def init_params(key):
    ks = jax.random.split(key, 10)
    L, H, I = NUM_LAYERS, HIDDEN, INTERMEDIATE

    def norm(k, shape):
        return jax.random.normal(k, shape, jnp.float32) * 0.02

    # fold the 1/sqrt(head_dim) attention scale into the Q projection
    scale = 1.0 / math.sqrt(HEAD_DIM)
    qkv_w = norm(ks[3], (L, H, 3 * H))
    qkv_w = qkv_w.at[:, :, :H].multiply(scale)
    qkv_b = jnp.zeros((L, 3 * H), jnp.float32)
    qkv_b = qkv_b.at[:, :H].multiply(scale)

    # packed per-layer small vectors -> single (L, 8, 128) slab
    vec = jnp.zeros((L, VEC_ROWS, VEC_COLS), jnp.float32)
    vec = vec.at[:, ROW_QKV_B, :3 * H].set(qkv_b)
    vec = vec.at[:, ROW_LN1_G, :H].set(1.0)
    vec = vec.at[:, ROW_LN2_G, :H].set(1.0)
    # ao_b / ln1_b / i_b / o_b / ln2_b stay zero (standard init)

    return {
        # embeddings stay f32 (used only in the XLA wrapper)
        "word_emb": norm(ks[0], (VOCAB, H)),
        "pos_emb": norm(ks[1], (MAX_POS, H)),
        "type_emb": norm(ks[2], (TYPE_VOCAB, H)),
        "emb_ln_g": jnp.ones((1, H), jnp.float32),
        "emb_ln_b": jnp.zeros((1, H), jnp.float32),
        # per-layer matmul weights stacked on L, stored bf16 (MXU-native,
        # halves the per-layer streaming DMA bytes)
        "qkv_w": qkv_w.astype(jnp.bfloat16),
        "ao_w": norm(ks[4], (L, H, H)).astype(jnp.bfloat16),
        "i_w": norm(ks[5], (L, H, I)).astype(jnp.bfloat16),
        "o_w": norm(ks[6], (L, I, H)).astype(jnp.bfloat16),
        "layer_vecs": vec,
        # pooler + regression head
        "pooler_w": norm(ks[7], (H, H)).astype(jnp.bfloat16),
        "pooler_b": jnp.zeros((1, H), jnp.float32),
        "regress_w": norm(ks[8], (1, H)),
        "regress_b": jnp.zeros((1, 1), jnp.float32),
    }


# ---------------- forward ----------------
def bert_regress_forward(params, input_ids, attention_mask):
    B, S = input_ids.shape
    H, I, L = HIDDEN, INTERMEDIATE, NUM_LAYERS

    # Embeddings (gather + sum + LayerNorm) stay in XLA: tiny work, and it
    # keeps the word-embedding slab out of VMEM residency inside the kernel.
    # TODO(synk): token_type_ids assumed all-zero, as in the reference call
    # self.bert(input_ids=..., attention_mask=...).
    word = jnp.take(params["word_emb"], input_ids.reshape(-1), axis=0)   # (B*S, H)
    pos = params["pos_emb"][:S]                                          # (S, H)
    typ = params["type_emb"][0:1]                                        # (1, H)
    emb = (word.reshape(B, S, H) + pos[None, :, :] + typ[None, :, :]).reshape(B * S, H)
    emb = _layernorm(emb, params["emb_ln_g"], params["emb_ln_b"])
    mask_bias = ((1.0 - attention_mask.astype(jnp.float32))
                 * -10000.0)[:, None, :]                                 # (B, 1, S)

    def res2(shape):
        return pl.BlockSpec(shape, lambda l: (0, 0))

    def res3(shape):
        return pl.BlockSpec(shape, lambda l: (0, 0, 0))

    def per_layer(shape):
        return pl.BlockSpec((1,) + shape, lambda l: (l, 0, 0))

    in_specs = [
        res2((B * S, H)),              # emb (f32)
        res3((B, 1, S)),               # attention mask bias (f32)
        per_layer((H, 3 * H)),         # qkv_w (bf16)
        per_layer((H, H)),             # ao_w (bf16)
        per_layer((H, I)),             # i_w (bf16)
        per_layer((I, H)),             # o_w (bf16)
        per_layer((VEC_ROWS, VEC_COLS)),  # packed per-layer vectors (f32)
        res2((H, H)),                  # pooler_w (bf16)
        res2((1, H)),                  # pooler_b
        res2((1, H)),                  # regress_w
        res2((1, 1)),                  # regress_b
    ]

    out_pad = pl.pallas_call(
        functools.partial(_fused_bert_kernel, B=B, S=S),
        out_shape=jax.ShapeDtypeStruct((B, OUT_LANES), jnp.float32),
        grid_spec=pltpu.PrefetchScalarGridSpec(
            num_scalar_prefetch=0,
            grid=(L,),
            in_specs=in_specs,
            out_specs=pl.BlockSpec((B, OUT_LANES), lambda l: (0, 0)),
            scratch_shapes=[pltpu.VMEM((B * S, H), jnp.float32)],
        ),
        compiler_params=pltpu.CompilerParams(
            dimension_semantics=("arbitrary",),
            vmem_limit_bytes=32 * 1024 * 1024),
    )(emb, mask_bias, params["qkv_w"], params["ao_w"], params["i_w"],
      params["o_w"], params["layer_vecs"], params["pooler_w"],
      params["pooler_b"], params["regress_w"], params["regress_b"])

    # regress_dropout(p=0.1) is identity in eval mode.
    # TODO(synk): training-mode MSE-loss branch not implemented (eval forward only).
    return {"output": out_pad[:, :1]}   # slice the lane-dense padded output


if __name__ == "__main__":
    key = jax.random.PRNGKey(0)
    pkey, ikey = jax.random.split(key)

    params = init_params(pkey)

    B, S = 2, 8
    input_ids = jax.random.randint(ikey, (B, S), 0, VOCAB, dtype=jnp.int32)
    attention_mask = jnp.array(
        [[1, 1, 1, 1, 1, 1, 1, 1],
         [1, 1, 1, 1, 1, 1, 0, 0]], dtype=jnp.int32)

    out = jax.jit(bert_regress_forward)(params, input_ids, attention_mask)
    jax.block_until_ready(out["output"])
    assert out["output"].shape == (B, 1)
    assert bool(jnp.all(jnp.isfinite(out["output"])))
    print("KERNEL_OK")
</pallas_src>

<mosaic_0001>
module attributes {stable_mosaic.version = 11 : i64} {
  func.func @_fused_bert_kernel(%arg0: i32, %arg1: memref<16x32xf32, #tpu.memory_space<vmem>>, %arg2: memref<2x1x8xf32, #tpu.memory_space<vmem>>, %arg3: memref<1x32x96xbf16, #tpu.memory_space<vmem>>, %arg4: memref<1x32x32xbf16, #tpu.memory_space<vmem>>, %arg5: memref<1x32x64xbf16, #tpu.memory_space<vmem>>, %arg6: memref<1x64x32xbf16, #tpu.memory_space<vmem>>, %arg7: memref<1x8x128xf32, #tpu.memory_space<vmem>>, %arg8: memref<32x32xbf16, #tpu.memory_space<vmem>>, %arg9: memref<1x32xf32, #tpu.memory_space<vmem>>, %arg10: memref<1x32xf32, #tpu.memory_space<vmem>>, %arg11: memref<1x1xf32, #tpu.memory_space<vmem>>, %arg12: memref<2x128xf32, #tpu.memory_space<vmem>>, %arg13: memref<16x32xf32, #tpu.memory_space<vmem>>) attributes {dimension_semantics = [#tpu.dimension_semantics<arbitrary>], iteration_bounds = array<i64: 2>, scalar_prefetch = 0 : i64, scratch_operands = 1 : i64, tpu.core_type = #tpu.core_type<tc>, window_params = [{pipeline_mode = #tpu.pipeline_mode<synchronous>, transform_indices = @transform_0, window_bounds = array<i64: 16, 32>}, {pipeline_mode = #tpu.pipeline_mode<synchronous>, transform_indices = @transform_1, window_bounds = array<i64: 2, 1, 8>}, {transform_indices = @transform_2, window_bounds = array<i64: 1, 32, 96>}, {transform_indices = @transform_3, window_bounds = array<i64: 1, 32, 32>}, {transform_indices = @transform_4, window_bounds = array<i64: 1, 32, 64>}, {transform_indices = @transform_5, window_bounds = array<i64: 1, 64, 32>}, {transform_indices = @transform_6, window_bounds = array<i64: 1, 8, 128>}, {pipeline_mode = #tpu.pipeline_mode<synchronous>, transform_indices = @transform_7, window_bounds = array<i64: 32, 32>}, {pipeline_mode = #tpu.pipeline_mode<synchronous>, transform_indices = @transform_8, window_bounds = array<i64: 1, 32>}, {pipeline_mode = #tpu.pipeline_mode<synchronous>, transform_indices = @transform_9, window_bounds = array<i64: 1, 32>}, {pipeline_mode = #tpu.pipeline_mode<synchronous>, transform_indices = @transform_10, window_bounds = array<i64: 1, 1>}, {pipeline_mode = #tpu.pipeline_mode<synchronous>, transform_indices = @transform_11, window_bounds = array<i64: 2, 128>}]} {
    %c0_i32 = arith.constant 0 : i32
    %0 = arith.cmpi eq, %arg0, %c0_i32 : i32
    %1 = arith.extui %0 : i1 to i32
    %c0_i32_0 = arith.constant 0 : i32
    %2 = arith.cmpi ne, %1, %c0_i32_0 : i32
    scf.if %2 {
      %c0_55 = arith.constant 0 : index
      %c0_56 = arith.constant 0 : index
      %194 = vector.load %arg1[%c0_55, %c0_56] : memref<16x32xf32, #tpu.memory_space<vmem>>, vector<16x32xf32>
      %c0_57 = arith.constant 0 : index
      %c0_58 = arith.constant 0 : index
      %195 = vector.load %arg13[%c0_57, %c0_58] : memref<16x32xf32, #tpu.memory_space<vmem>>, vector<16x32xf32>
      tpu.vector_store %arg13[%c0_57, %c0_58], %194 {strides = array<i32>} : memref<16x32xf32, #tpu.memory_space<vmem>>, vector<16x32xf32>,
    } else {
    }
    %c0 = arith.constant 0 : index
    %c0_1 = arith.constant 0 : index
    %3 = vector.load %arg13[%c0, %c0_1] : memref<16x32xf32, #tpu.memory_space<vmem>>, vector<16x32xf32>
    %c0_2 = arith.constant 0 : index
    %c0_3 = arith.constant 0 : index
    %c0_4 = arith.constant 0 : index
    %4 = vector.load %arg7[%c0_2, %c0_3, %c0_4] : memref<1x8x128xf32, #tpu.memory_space<vmem>>, vector<1x8x128xf32>
    %5 = vector.shape_cast %4 : vector<1x8x128xf32> to vector<8x128xf32>
    %6 = vector.extract_strided_slice %5 {offsets = [0, 0], sizes = [1, 96], strides = [1, 1]} : vector<8x128xf32> to vector<1x96xf32>
    %7 = vector.extract_strided_slice %5 {offsets = [1, 0], sizes = [1, 32], strides = [1, 1]} : vector<8x128xf32> to vector<1x32xf32>
    %8 = vector.extract_strided_slice %5 {offsets = [2, 0], sizes = [1, 32], strides = [1, 1]} : vector<8x128xf32> to vector<1x32xf32>
    %9 = vector.extract_strided_slice %5 {offsets = [3, 0], sizes = [1, 32], strides = [1, 1]} : vector<8x128xf32> to vector<1x32xf32>
    %10 = vector.extract_strided_slice %5 {offsets = [4, 0], sizes = [1, 64], strides = [1, 1]} : vector<8x128xf32> to vector<1x64xf32>
    %11 = vector.extract_strided_slice %5 {offsets = [5, 0], sizes = [1, 32], strides = [1, 1]} : vector<8x128xf32> to vector<1x32xf32>
    %12 = vector.extract_strided_slice %5 {offsets = [6, 0], sizes = [1, 32], strides = [1, 1]} : vector<8x128xf32> to vector<1x32xf32>
    %13 = vector.extract_strided_slice %5 {offsets = [7, 0], sizes = [1, 32], strides = [1, 1]} : vector<8x128xf32> to vector<1x32xf32>
    %14 = arith.truncf %3 : vector<16x32xf32> to vector<16x32xbf16>
    %c0_5 = arith.constant 0 : index
    %c0_6 = arith.constant 0 : index
    %c0_7 = arith.constant 0 : index
    %15 = vector.load %arg3[%c0_5, %c0_6, %c0_7] : memref<1x32x96xbf16, #tpu.memory_space<vmem>>, vector<1x32x96xbf16>
    %16 = vector.shape_cast %15 : vector<1x32x96xbf16> to vector<32x96xbf16>
    %cst = arith.constant dense<0.000000e+00> : vector<16x96xf32>
    %17 = tpu.matmul %14, %16, %cst {dimension_numbers = #tpu.dot_dimension_numbers<[1], [0], [0], [1], [0, 0, 1, 1], [], []>} : vector<16x32xbf16>, vector<32x96xbf16>, vector<16x96xf32> -> vector<16x96xf32>
    %18 = vector.broadcast %6 : vector<1x96xf32> to vector<16x96xf32>
    %19 = arith.addf %17, %18 : vector<16x96xf32>
    %c0_8 = arith.constant 0 : index
    %c0_9 = arith.constant 0 : index
    %c0_10 = arith.constant 0 : index
    %20 = vector.load %arg2[%c0_8, %c0_9, %c0_10] : memref<2x1x8xf32, #tpu.memory_space<vmem>>, vector<2x1x8xf32>
    %21 = vector.shape_cast %20 : vector<2x1x8xf32> to vector<2x1x8xf32>
    %22 = vector.broadcast %21 : vector<2x1x8xf32> to vector<2x8x8xf32>
    %23 = vector.extract_strided_slice %19 {offsets = [0, 0], sizes = [16, 8], strides = [1, 1]} : vector<16x96xf32> to vector<16x8xf32>
    %24 = vector.shape_cast %23 : vector<16x8xf32> to vector<2x8x8xf32>
    %25 = arith.truncf %24 : vector<2x8x8xf32> to vector<2x8x8xbf16>
    %26 = vector.extract_strided_slice %19 {offsets = [0, 32], sizes = [16, 8], strides = [1, 1]} : vector<16x96xf32> to vector<16x8xf32>
    %27 = vector.shape_cast %26 : vector<16x8xf32> to vector<2x8x8xf32>
    %28 = arith.truncf %27 : vector<2x8x8xf32> to vector<2x8x8xbf16>
    %29 = vector.extract_strided_slice %19 {offsets = [0, 64], sizes = [16, 8], strides = [1, 1]} : vector<16x96xf32> to vector<16x8xf32>
    %30 = vector.shape_cast %29 : vector<16x8xf32> to vector<2x8x8xf32>
    %31 = arith.truncf %30 : vector<2x8x8xf32> to vector<2x8x8xbf16>
    "tpu.trace_start"() <{level = 10 : i32, message = "bqd,bkd->bqk"}> : () -> ()
    %cst_11 = arith.constant dense<0.000000e+00> : vector<2x8x8xf32>
    %32 = tpu.matmul %25, %28, %cst_11 {dimension_numbers = #tpu.dot_dimension_numbers<[2], [2], [1], [1], [0, 0, 0, 1, 1, 1], [0], [0]>} : vector<2x8x8xbf16>, vector<2x8x8xbf16>, vector<2x8x8xf32> -> vector<2x8x8xf32>
    "tpu.trace_stop"() : () -> ()
    %33 = arith.addf %32, %22 : vector<2x8x8xf32>
    %cst_12 = arith.constant dense<0xFF800000> : vector<2x8xf32>
    %34 = vector.multi_reduction <maximumf>, %33, %cst_12 [2] : vector<2x8x8xf32> to vector<2x8xf32>
    %35 = vector.shape_cast %34 : vector<2x8xf32> to vector<2x8x1xf32>
    %36 = vector.broadcast %35 : vector<2x8x1xf32> to vector<2x8x8xf32>
    %37 = arith.subf %33, %36 : vector<2x8x8xf32>
    %38 = math.exp %37 : vector<2x8x8xf32>
    %cst_13 = arith.constant dense<0.000000e+00> : vector<2x8xf32>
    %39 = vector.multi_reduction <add>, %38, %cst_13 [2] : vector<2x8x8xf32> to vector<2x8xf32>
    %40 = vector.shape_cast %39 : vector<2x8xf32> to vector<2x8x1xf32>
    %41 = tpu.reciprocal %40 {approx = true} : vector<2x8x1xf32> -> vector<2x8x1xf32>
    %42 = vector.broadcast %41 : vector<2x8x1xf32> to vector<2x8x8xf32>
    %43 = arith.mulf %38, %42 : vector<2x8x8xf32>
    %44 = arith.truncf %43 : vector<2x8x8xf32> to vector<2x8x8xbf16>
    "tpu.trace_start"() <{level = 10 : i32, message = "bqk,bkd->bqd"}> : () -> ()
    %cst_14 = arith.constant dense<0.000000e+00> : vector<2x8x8xf32>
    %45 = tpu.matmul %44, %31, %cst_14 {dimension_numbers = #tpu.dot_dimension_numbers<[2], [1], [1], [2], [0, 0, 0, 1, 1, 2], [0], [0]>} : vector<2x8x8xbf16>, vector<2x8x8xbf16>, vector<2x8x8xf32> -> vector<2x8x8xf32>
    "tpu.trace_stop"() : () -> ()
    %46 = vector.shape_cast %45 : vector<2x8x8xf32> to vector<16x8xf32>
    %47 = vector.extract_strided_slice %19 {offsets = [0, 8], sizes = [16, 8], strides = [1, 1]} : vector<16x96xf32> to vector<16x8xf32>
    %48 = vector.shape_cast %47 : vector<16x8xf32> to vector<2x8x8xf32>
    %49 = arith.truncf %48 : vector<2x8x8xf32> to vector<2x8x8xbf16>
    %50 = vector.extract_strided_slice %19 {offsets = [0, 40], sizes = [16, 8], strides = [1, 1]} : vector<16x96xf32> to vector<16x8xf32>
    %51 = vector.shape_cast %50 : vector<16x8xf32> to vector<2x8x8xf32>
    %52 = arith.truncf %51 : vector<2x8x8xf32> to vector<2x8x8xbf16>
    %53 = vector.extract_strided_slice %19 {offsets = [0, 72], sizes = [16, 8], strides = [1, 1]} : vector<16x96xf32> to vector<16x8xf32>
    %54 = vector.shape_cast %53 : vector<16x8xf32> to vector<2x8x8xf32>
    %55 = arith.truncf %54 : vector<2x8x8xf32> to vector<2x8x8xbf16>
    "tpu.trace_start"() <{level = 10 : i32, message = "bqd,bkd->bqk"}> : () -> ()
    %cst_15 = arith.constant dense<0.000000e+00> : vector<2x8x8xf32>
    %56 = tpu.matmul %49, %52, %cst_15 {dimension_numbers = #tpu.dot_dimension_numbers<[2], [2], [1], [1], [0, 0, 0, 1, 1, 1], [0], [0]>} : vector<2x8x8xbf16>, vector<2x8x8xbf16>, vector<2x8x8xf32> -> vector<2x8x8xf32>
    "tpu.trace_stop"() : () -> ()
    %57 = arith.addf %56, %22 : vector<2x8x8xf32>
    %cst_16 = arith.constant dense<0xFF800000> : vector<2x8xf32>
    %58 = vector.multi_reduction <maximumf>, %57, %cst_16 [2] : vector<2x8x8xf32> to vector<2x8xf32>
    %59 = vector.shape_cast %58 : vector<2x8xf32> to vector<2x8x1xf32>
    %60 = vector.broadcast %59 : vector<2x8x1xf32> to vector<2x8x8xf32>
    %61 = arith.subf %57, %60 : vector<2x8x8xf32>
    %62 = math.exp %61 : vector<2x8x8xf32>
    %cst_17 = arith.constant dense<0.000000e+00> : vector<2x8xf32>
    %63 = vector.multi_reduction <add>, %62, %cst_17 [2] : vector<2x8x8xf32> to vector<2x8xf32>
    %64 = vector.shape_cast %63 : vector<2x8xf32> to vector<2x8x1xf32>
    %65 = tpu.reciprocal %64 {approx = true} : vector<2x8x1xf32> -> vector<2x8x1xf32>
    %66 = vector.broadcast %65 : vector<2x8x1xf32> to vector<2x8x8xf32>
    %67 = arith.mulf %62, %66 : vector<2x8x8xf32>
    %68 = arith.truncf %67 : vector<2x8x8xf32> to vector<2x8x8xbf16>
    "tpu.trace_start"() <{level = 10 : i32, message = "bqk,bkd->bqd"}> : () -> ()
    %cst_18 = arith.constant dense<0.000000e+00> : vector<2x8x8xf32>
    %69 = tpu.matmul %68, %55, %cst_18 {dimension_numbers = #tpu.dot_dimension_numbers<[2], [1], [1], [2], [0, 0, 0, 1, 1, 2], [0], [0]>} : vector<2x8x8xbf16>, vector<2x8x8xbf16>, vector<2x8x8xf32> -> vector<2x8x8xf32>
    "tpu.trace_stop"() : () -> ()
    %70 = vector.shape_cast %69 : vector<2x8x8xf32> to vector<16x8xf32>
    %71 = vector.extract_strided_slice %19 {offsets = [0, 16], sizes = [16, 8], strides = [1, 1]} : vector<16x96xf32> to vector<16x8xf32>
    %72 = vector.shape_cast %71 : vector<16x8xf32> to vector<2x8x8xf32>
    %73 = arith.truncf %72 : vector<2x8x8xf32> to vector<2x8x8xbf16>
    %74 = vector.extract_strided_slice %19 {offsets = [0, 48], sizes = [16, 8], strides = [1, 1]} : vector<16x96xf32> to vector<16x8xf32>
    %75 = vector.shape_cast %74 : vector<16x8xf32> to vector<2x8x8xf32>
    %76 = arith.truncf %75 : vector<2x8x8xf32> to vector<2x8x8xbf16>
    %77 = vector.extract_strided_slice %19 {offsets = [0, 80], sizes = [16, 8], strides = [1, 1]} : vector<16x96xf32> to vector<16x8xf32>
    %78 = vector.shape_cast %77 : vector<16x8xf32> to vector<2x8x8xf32>
    %79 = arith.truncf %78 : vector<2x8x8xf32> to vector<2x8x8xbf16>
    "tpu.trace_start"() <{level = 10 : i32, message = "bqd,bkd->bqk"}> : () -> ()
    %cst_19 = arith.constant dense<0.000000e+00> : vector<2x8x8xf32>
    %80 = tpu.matmul %73, %76, %cst_19 {dimension_numbers = #tpu.dot_dimension_numbers<[2], [2], [1], [1], [0, 0, 0, 1, 1, 1], [0], [0]>} : vector<2x8x8xbf16>, vector<2x8x8xbf16>, vector<2x8x8xf32> -> vector<2x8x8xf32>
    "tpu.trace_stop"() : () -> ()
    %81 = arith.addf %80, %22 : vector<2x8x8xf32>
    %cst_20 = arith.constant dense<0xFF800000> : vector<2x8xf32>
    %82 = vector.multi_reduction <maximumf>, %81, %cst_20 [2] : vector<2x8x8xf32> to vector<2x8xf32>
    %83 = vector.shape_cast %82 : vector<2x8xf32> to vector<2x8x1xf32>
    %84 = vector.broadcast %83 : vector<2x8x1xf32> to vector<2x8x8xf32>
    %85 = arith.subf %81, %84 : vector<2x8x8xf32>
    %86 = math.exp %85 : vector<2x8x8xf32>
    %cst_21 = arith.constant dense<0.000000e+00> : vector<2x8xf32>
    %87 = vector.multi_reduction <add>, %86, %cst_21 [2] : vector<2x8x8xf32> to vector<2x8xf32>
    %88 = vector.shape_cast %87 : vector<2x8xf32> to vector<2x8x1xf32>
    %89 = tpu.reciprocal %88 {approx = true} : vector<2x8x1xf32> -> vector<2x8x1xf32>
    %90 = vector.broadcast %89 : vector<2x8x1xf32> to vector<2x8x8xf32>
    %91 = arith.mulf %86, %90 : vector<2x8x8xf32>
    %92 = arith.truncf %91 : vector<2x8x8xf32> to vector<2x8x8xbf16>
    "tpu.trace_start"() <{level = 10 : i32, message = "bqk,bkd->bqd"}> : () -> ()
    %cst_22 = arith.constant dense<0.000000e+00> : vector<2x8x8xf32>
    %93 = tpu.matmul %92, %79, %cst_22 {dimension_numbers = #tpu.dot_dimension_numbers<[2], [1], [1], [2], [0, 0, 0, 1, 1, 2], [0], [0]>} : vector<2x8x8xbf16>, vector<2x8x8xbf16>, vector<2x8x8xf32> -> vector<2x8x8xf32>
    "tpu.trace_stop"() : () -> ()
    %94 = vector.shape_cast %93 : vector<2x8x8xf32> to vector<16x8xf32>
    %95 = vector.extract_strided_slice %19 {offsets = [0, 24], sizes = [16, 8], strides = [1, 1]} : vector<16x96xf32> to vector<16x8xf32>
    %96 = vector.shape_cast %95 : vector<16x8xf32> to vector<2x8x8xf32>
    %97 = arith.truncf %96 : vector<2x8x8xf32> to vector<2x8x8xbf16>
    %98 = vector.extract_strided_slice %19 {offsets = [0, 56], sizes = [16, 8], strides = [1, 1]} : vector<16x96xf32> to vector<16x8xf32>
    %99 = vector.shape_cast %98 : vector<16x8xf32> to vector<2x8x8xf32>
    %100 = arith.truncf %99 : vector<2x8x8xf32> to vector<2x8x8xbf16>
    %101 = vector.extract_strided_slice %19 {offsets = [0, 88], sizes = [16, 8], strides = [1, 1]} : vector<16x96xf32> to vector<16x8xf32>
    %102 = vector.shape_cast %101 : vector<16x8xf32> to vector<2x8x8xf32>
    %103 = arith.truncf %102 : vector<2x8x8xf32> to vector<2x8x8xbf16>
    "tpu.trace_start"() <{level = 10 : i32, message = "bqd,bkd->bqk"}> : () -> ()
    %cst_23 = arith.constant dense<0.000000e+00> : vector<2x8x8xf32>
    %104 = tpu.matmul %97, %100, %cst_23 {dimension_numbers = #tpu.dot_dimension_numbers<[2], [2], [1], [1], [0, 0, 0, 1, 1, 1], [0], [0]>} : vector<2x8x8xbf16>, vector<2x8x8xbf16>, vector<2x8x8xf32> -> vector<2x8x8xf32>
    "tpu.trace_stop"() : () -> ()
    %105 = arith.addf %104, %22 : vector<2x8x8xf32>
    %cst_24 = arith.constant dense<0xFF800000> : vector<2x8xf32>
    %106 = vector.multi_reduction <maximumf>, %105, %cst_24 [2] : vector<2x8x8xf32> to vector<2x8xf32>
    %107 = vector.shape_cast %106 : vector<2x8xf32> to vector<2x8x1xf32>
    %108 = vector.broadcast %107 : vector<2x8x1xf32> to vector<2x8x8xf32>
    %109 = arith.subf %105, %108 : vector<2x8x8xf32>
    %110 = math.exp %109 : vector<2x8x8xf32>
    %cst_25 = arith.constant dense<0.000000e+00> : vector<2x8xf32>
    %111 = vector.multi_reduction <add>, %110, %cst_25 [2] : vector<2x8x8xf32> to vector<2x8xf32>
    %112 = vector.shape_cast %111 : vector<2x8xf32> to vector<2x8x1xf32>
    %113 = tpu.reciprocal %112 {approx = true} : vector<2x8x1xf32> -> vector<2x8x1xf32>
    %114 = vector.broadcast %113 : vector<2x8x1xf32> to vector<2x8x8xf32>
    %115 = arith.mulf %110, %114 : vector<2x8x8xf32>
    %116 = arith.truncf %115 : vector<2x8x8xf32> to vector<2x8x8xbf16>
    "tpu.trace_start"() <{level = 10 : i32, message = "bqk,bkd->bqd"}> : () -> ()
    %cst_26 = arith.constant dense<0.000000e+00> : vector<2x8x8xf32>
    %117 = tpu.matmul %116, %103, %cst_26 {dimension_numbers = #tpu.dot_dimension_numbers<[2], [1], [1], [2], [0, 0, 0, 1, 1, 2], [0], [0]>} : vector<2x8x8xbf16>, vector<2x8x8xbf16>, vector<2x8x8xf32> -> vector<2x8x8xf32>
    "tpu.trace_stop"() : () -> ()
    %118 = vector.shape_cast %117 : vector<2x8x8xf32> to vector<16x8xf32>
    %119 = tpu.concatenate %46, %70, %94, %118 in 1 : vector<16x8xf32>, vector<16x8xf32>, vector<16x8xf32>, vector<16x8xf32> -> vector<16x32xf32>
    %120 = arith.truncf %119 : vector<16x32xf32> to vector<16x32xbf16>
    %c0_27 = arith.constant 0 : index
    %c0_28 = arith.constant 0 : index
    %c0_29 = arith.constant 0 : index
    %121 = vector.load %arg4[%c0_27, %c0_28, %c0_29] : memref<1x32x32xbf16, #tpu.memory_space<vmem>>, vector<1x32x32xbf16>
    %122 = vector.shape_cast %121 : vector<1x32x32xbf16> to vector<32x32xbf16>
    %cst_30 = arith.constant dense<0.000000e+00> : vector<16x32xf32>
    %123 = tpu.matmul %120, %122, %cst_30 {dimension_numbers = #tpu.dot_dimension_numbers<[1], [0], [0], [1], [0, 0, 1, 1], [], []>} : vector<16x32xbf16>, vector<32x32xbf16>, vector<16x32xf32> -> vector<16x32xf32>
    %124 = vector.broadcast %7 : vector<1x32xf32> to vector<16x32xf32>
    %125 = arith.addf %123, %124 : vector<16x32xf32>
    %126 = arith.addf %125, %3 : vector<16x32xf32>
    %cst_31 = arith.constant dense<0.000000e+00> : vector<16xf32>
    %127 = vector.multi_reduction <add>, %126, %cst_31 [1] : vector<16x32xf32> to vector<16xf32>
    %128 = vector.shape_cast %127 : vector<16xf32> to vector<16x1xf32>
    %cst_32 = arith.constant 3.200000e+01 : f32
    %129 = vector.broadcast %cst_32 : f32 to vector<16x1xf32>
    %130 = arith.divf %128, %129 : vector<16x1xf32>
    %131 = vector.broadcast %130 : vector<16x1xf32> to vector<16x32xf32>
    %132 = arith.subf %126, %131 : vector<16x32xf32>
    %133 = arith.mulf %132, %132 : vector<16x32xf32>
    %cst_33 = arith.constant dense<0.000000e+00> : vector<16xf32>
    %134 = vector.multi_reduction <add>, %133, %cst_33 [1] : vector<16x32xf32> to vector<16xf32>
    %135 = vector.shape_cast %134 : vector<16xf32> to vector<16x1xf32>
    %cst_34 = arith.constant 3.200000e+01 : f32
    %136 = vector.broadcast %cst_34 : f32 to vector<16x1xf32>
    %137 = arith.divf %135, %136 : vector<16x1xf32>
    %cst_35 = arith.constant 9.99999996E-13 : f32
    %138 = vector.broadcast %cst_35 : f32 to vector<16x1xf32>
    %139 = arith.addf %137, %138 : vector<16x1xf32>
    %140 = math.rsqrt %139 : vector<16x1xf32>
    %141 = vector.broadcast %140 : vector<16x1xf32> to vector<16x32xf32>
    %142 = arith.mulf %132, %141 : vector<16x32xf32>
    %143 = vector.broadcast %8 : vector<1x32xf32> to vector<16x32xf32>
    %144 = arith.mulf %142, %143 : vector<16x32xf32>
    %145 = vector.broadcast %9 : vector<1x32xf32> to vector<16x32xf32>
    %146 = arith.addf %144, %145 : vector<16x32xf32>
    %147 = arith.truncf %146 : vector<16x32xf32> to vector<16x32xbf16>
    %c0_36 = arith.constant 0 : index
    %c0_37 = arith.constant 0 : index
    %c0_38 = arith.constant 0 : index
    %148 = vector.load %arg5[%c0_36, %c0_37, %c0_38] : memref<1x32x64xbf16, #tpu.memory_space<vmem>>, vector<1x32x64xbf16>
    %149 = vector.shape_cast %148 : vector<1x32x64xbf16> to vector<32x64xbf16>
    %cst_39 = arith.constant dense<0.000000e+00> : vector<16x64xf32>
    %150 = tpu.matmul %147, %149, %cst_39 {dimension_numbers = #tpu.dot_dimension_numbers<[1], [0], [0], [1], [0, 0, 1, 1], [], []>} : vector<16x32xbf16>, vector<32x64xbf16>, vector<16x64xf32> -> vector<16x64xf32>
    %151 = vector.broadcast %10 : vector<1x64xf32> to vector<16x64xf32>
    %152 = arith.addf %150, %151 : vector<16x64xf32>
    %cst_40 = arith.constant 5.000000e-01 : f32
    %153 = vector.broadcast %cst_40 : f32 to vector<16x64xf32>
    %154 = arith.mulf %153, %152 : vector<16x64xf32>
    %cst_41 = arith.constant 0.707106769 : f32
    %155 = vector.broadcast %cst_41 : f32 to vector<16x64xf32>
    %156 = arith.mulf %152, %155 : vector<16x64xf32>
    %157 = math.erf %156 : vector<16x64xf32>
    %cst_42 = arith.constant 1.000000e+00 : f32
    %158 = vector.broadcast %cst_42 : f32 to vector<16x64xf32>
    %159 = arith.addf %158, %157 : vector<16x64xf32>
    %160 = arith.mulf %154, %159 : vector<16x64xf32>
    %161 = arith.truncf %160 : vector<16x64xf32> to vector<16x64xbf16>
    %c0_43 = arith.constant 0 : index
    %c0_44 = arith.constant 0 : index
    %c0_45 = arith.constant 0 : index
    %162 = vector.load %arg6[%c0_43, %c0_44, %c0_45] : memref<1x64x32xbf16, #tpu.memory_space<vmem>>, vector<1x64x32xbf16>
    %163 = vector.shape_cast %162 : vector<1x64x32xbf16> to vector<64x32xbf16>
    %cst_46 = arith.constant dense<0.000000e+00> : vector<16x32xf32>
    %164 = tpu.matmul %161, %163, %cst_46 {dimension_numbers = #tpu.dot_dimension_numbers<[1], [0], [0], [1], [0, 0, 1, 1], [], []>} : vector<16x64xbf16>, vector<64x32xbf16>, vector<16x32xf32> -> vector<16x32xf32>
    %165 = vector.broadcast %11 : vector<1x32xf32> to vector<16x32xf32>
    %166 = arith.addf %164, %165 : vector<16x32xf32>
    %167 = arith.addf %166, %146 : vector<16x32xf32>
    %cst_47 = arith.constant dense<0.000000e+00> : vector<16xf32>
    %168 = vector.multi_reduction <add>, %167, %cst_47 [1] : vector<16x32xf32> to vector<16xf32>
    %169 = vector.shape_cast %168 : vector<16xf32> to vector<16x1xf32>
    %cst_48 = arith.constant 3.200000e+01 : f32
    %170 = vector.broadcast %cst_48 : f32 to vector<16x1xf32>
    %171 = arith.divf %169, %170 : vector<16x1xf32>
    %172 = vector.broadcast %171 : vector<16x1xf32> to vector<16x32xf32>
    %173 = arith.subf %167, %172 : vector<16x32xf32>
    %174 = arith.mulf %173, %173 : vector<16x32xf32>
    %cst_49 = arith.constant dense<0.000000e+00> : vector<16xf32>
    %175 = vector.multi_reduction <add>, %174, %cst_49 [1] : vector<16x32xf32> to vector<16xf32>
    %176 = vector.shape_cast %175 : vector<16xf32> to vector<16x1xf32>
    %cst_50 = arith.constant 3.200000e+01 : f32
    %177 = vector.broadcast %cst_50 : f32 to vector<16x1xf32>
    %178 = arith.divf %176, %177 : vector<16x1xf32>
    %cst_51 = arith.constant 9.99999996E-13 : f32
    %179 = vector.broadcast %cst_51 : f32 to vector<16x1xf32>
    %180 = arith.addf %178, %179 : vector<16x1xf32>
    %181 = math.rsqrt %180 : vector<16x1xf32>
    %182 = vector.broadcast %181 : vector<16x1xf32> to vector<16x32xf32>
    %183 = arith.mulf %173, %182 : vector<16x32xf32>
    %184 = vector.broadcast %12 : vector<1x32xf32> to vector<16x32xf32>
    %185 = arith.mulf %183, %184 : vector<16x32xf32>
    %186 = vector.broadcast %13 : vector<1x32xf32> to vector<16x32xf32>
    %187 = arith.addf %185, %186 : vector<16x32xf32>
    %c1_i32 = arith.constant 1 : i32
    %188 = arith.cmpi slt, %arg0, %c1_i32 : i32
    %189 = arith.extui %188 : i1 to i32
    %c0_i32_52 = arith.constant 0 : i32
    %190 = arith.cmpi ne, %189, %c0_i32_52 : i32
    scf.if %190 {
      %c0_55 = arith.constant 0 : index
      %c0_56 = arith.constant 0 : index
      %194 = vector.load %arg13[%c0_55, %c0_56] : memref<16x32xf32, #tpu.memory_space<vmem>>, vector<16x32xf32>
      tpu.vector_store %arg13[%c0_55, %c0_56], %187 {strides = array<i32>} : memref<16x32xf32, #tpu.memory_space<vmem>>, vector<16x32xf32>,
    } else {
    }
    %c1_i32_53 = arith.constant 1 : i32
    %191 = arith.cmpi eq, %arg0, %c1_i32_53 : i32
    %192 = arith.extui %191 : i1 to i32
    %c0_i32_54 = arith.constant 0 : i32
    %193 = arith.cmpi ne, %192, %c0_i32_54 : i32
    scf.if %193 {
      %194 = vector.extract_strided_slice %187 {offsets = [0, 0], sizes = [1, 32], strides = [1, 1]} : vector<16x32xf32> to vector<1x32xf32>
      %195 = vector.extract_strided_slice %187 {offsets = [8, 0], sizes = [1, 32], strides = [1, 1]} : vector<16x32xf32> to vector<1x32xf32>
      %196 = tpu.concatenate %194, %195 in 0 : vector<1x32xf32>, vector<1x32xf32> -> vector<2x32xf32>
      %197 = arith.truncf %196 : vector<2x32xf32> to vector<2x32xbf16>
      %c0_55 = arith.constant 0 : index
      %c0_56 = arith.constant 0 : index
      %198 = vector.load %arg8[%c0_55, %c0_56] : memref<32x32xbf16, #tpu.memory_space<vmem>>, vector<32x32xbf16>
      %cst_57 = arith.constant dense<0.000000e+00> : vector<2x32xf32>
      %199 = tpu.matmul %197, %198, %cst_57 {dimension_numbers = #tpu.dot_dimension_numbers<[1], [0], [0], [1], [0, 0, 1, 1], [], []>} : vector<2x32xbf16>, vector<32x32xbf16>, vector<2x32xf32> -> vector<2x32xf32>
      %c0_58 = arith.constant 0 : index
      %c0_59 = arith.constant 0 : index
      %200 = vector.load %arg9[%c0_58, %c0_59] : memref<1x32xf32, #tpu.memory_space<vmem>>, vector<1x32xf32>
      %201 = vector.broadcast %200 : vector<1x32xf32> to vector<2x32xf32>
      %202 = arith.addf %199, %201 : vector<2x32xf32>
      %203 = math.tanh %202 : vector<2x32xf32>
      %c0_60 = arith.constant 0 : index
      %c0_61 = arith.constant 0 : index
      %204 = vector.load %arg10[%c0_60, %c0_61] : memref<1x32xf32, #tpu.memory_space<vmem>>, vector<1x32xf32>
      %205 = vector.broadcast %204 : vector<1x32xf32> to vector<2x32xf32>
      %206 = arith.mulf %203, %205 : vector<2x32xf32>
      %cst_62 = arith.constant dense<0.000000e+00> : vector<2xf32>
      %207 = vector.multi_reduction <add>, %206, %cst_62 [1] : vector<2x32xf32> to vector<2xf32>
      %208 = vector.shape_cast %207 : vector<2xf32> to vector<2x1xf32>
      %c0_63 = arith.constant 0 : index
      %c0_64 = arith.constant 0 : index
      %209 = vector.load %arg11[%c0_63, %c0_64] : memref<1x1xf32, #tpu.memory_space<vmem>>, vector<1x1xf32>
      %210 = vector.broadcast %209 : vector<1x1xf32> to vector<2x1xf32>
      %211 = arith.addf %208, %210 : vector<2x1xf32>
      %212 = vector.shape_cast %211 : vector<2x1xf32> to vector<2x1xf32>
      %213 = vector.broadcast %212 : vector<2x1xf32> to vector<2x128xf32>
      %c0_65 = arith.constant 0 : index
      %c0_66 = arith.constant 0 : index
      %214 = vector.load %arg12[%c0_65, %c0_66] : memref<2x128xf32, #tpu.memory_space<vmem>>, vector<2x128xf32>
      tpu.vector_store %arg12[%c0_65, %c0_66], %213 {strides = array<i32>} : memref<2x128xf32, #tpu.memory_space<vmem>>, vector<2x128xf32>,
    } else {
    }
    return
  }
  func.func @transform_0(%arg0: i32) -> (i32, i32) {
    %c0_i32 = arith.constant 0 : i32
    %c0_i32_0 = arith.constant 0 : i32
    %c0_i32_1 = arith.constant 0 : i32
    return %c0_i32, %c0_i32_0 : i32, i32
  }
  func.func @transform_1(%arg0: i32) -> (i32, i32, i32) {
    %c0_i32 = arith.constant 0 : i32
    %c0_i32_0 = arith.constant 0 : i32
    %c0_i32_1 = arith.constant 0 : i32
    %c0_i32_2 = arith.constant 0 : i32
    return %c0_i32, %c0_i32_0, %c0_i32_1 : i32, i32, i32
  }
  func.func @transform_2(%arg0: i32) -> (i32, i32, i32) {
    %c0_i32 = arith.constant 0 : i32
    %c0_i32_0 = arith.constant 0 : i32
    %c0_i32_1 = arith.constant 0 : i32
    return %arg0, %c0_i32, %c0_i32_0 : i32, i32, i32
  }
  func.func @transform_3(%arg0: i32) -> (i32, i32, i32) {
    %c0_i32 = arith.constant 0 : i32
    %c0_i32_0 = arith.constant 0 : i32
    %c0_i32_1 = arith.constant 0 : i32
    return %arg0, %c0_i32, %c0_i32_0 : i32, i32, i32
  }
  func.func @transform_4(%arg0: i32) -> (i32, i32, i32) {
    %c0_i32 = arith.constant 0 : i32
    %c0_i32_0 = arith.constant 0 : i32
    %c0_i32_1 = arith.constant 0 : i32
    return %arg0, %c0_i32, %c0_i32_0 : i32, i32, i32
  }
  func.func @transform_5(%arg0: i32) -> (i32, i32, i32) {
    %c0_i32 = arith.constant 0 : i32
    %c0_i32_0 = arith.constant 0 : i32
    %c0_i32_1 = arith.constant 0 : i32
    return %arg0, %c0_i32, %c0_i32_0 : i32, i32, i32
  }
  func.func @transform_6(%arg0: i32) -> (i32, i32, i32) {
    %c0_i32 = arith.constant 0 : i32
    %c0_i32_0 = arith.constant 0 : i32
    %c0_i32_1 = arith.constant 0 : i32
    return %arg0, %c0_i32, %c0_i32_0 : i32, i32, i32
  }
  func.func @transform_7(%arg0: i32) -> (i32, i32) {
    %c0_i32 = arith.constant 0 : i32
    %c0_i32_0 = arith.constant 0 : i32
    %c0_i32_1 = arith.constant 0 : i32
    return %c0_i32, %c0_i32_0 : i32, i32
  }
  func.func @transform_8(%arg0: i32) -> (i32, i32) {
    %c0_i32 = arith.constant 0 : i32
    %c0_i32_0 = arith.constant 0 : i32
    %c0_i32_1 = arith.constant 0 : i32
    return %c0_i32, %c0_i32_0 : i32, i32
  }
  func.func @transform_9(%arg0: i32) -> (i32, i32) {
    %c0_i32 = arith.constant 0 : i32
    %c0_i32_0 = arith.constant 0 : i32
    %c0_i32_1 = arith.constant 0 : i32
    return %c0_i32, %c0_i32_0 : i32, i32
  }
  func.func @transform_10(%arg0: i32) -> (i32, i32) {
    %c0_i32 = arith.constant 0 : i32
    %c0_i32_0 = arith.constant 0 : i32
    %c0_i32_1 = arith.constant 0 : i32
    return %c0_i32, %c0_i32_0 : i32, i32
  }
  func.func @transform_11(%arg0: i32) -> (i32, i32) {
    %c0_i32 = arith.constant 0 : i32
    %c0_i32_0 = arith.constant 0 : i32
    %c0_i32_1 = arith.constant 0 : i32
    return %c0_i32, %c0_i32_0 : i32, i32
  }
}

</mosaic_0001>

<bundles_post_ra>
// kernel: bert_regress_forward.1
= control target key start
LH: loop header
LB: loop body
LE: loop exit
PB: predicated region body
PF: predicated region fallthrough
CT: control target
= control target key end

     0   :  { %s2386_s19 = smov 0   ;;  %s2673_s0 = inlined_call_operand.vmem [shape: f32[16,32], index: 0, kind: input, shape index: {}]   ;;  %s2674_s1 = inlined_call_operand.vmem [shape: f32[2,1,8], index: 1, kind: input, shape index: {}]   ;;  %s2675_s2 = inlined_call_operand.vmem [shape: bf16[2,32,96], index: 2, kind: input, shape index: {}]   ;;  %s2676_s3 = inlined_call_operand.vmem [shape: bf16[2,32,32], index: 3, kind: input, shape index: {}]   ;;  %s2677_s4 = inlined_call_operand.vmem [shape: bf16[2,32,64], index: 4, kind: input, shape index: {}]   ;;  %s2678_s5 = inlined_call_operand.vmem [shape: bf16[2,64,32], index: 5, kind: input, shape index: {}]   ;;  %s2679_s6 = inlined_call_operand.vmem [shape: f32[2,8,128], index: 6, kind: input, shape index: {}]   ;;  %s2680_s7 = inlined_call_operand.vmem [shape: bf16[32,32], index: 7, kind: input, shape index: {}]   ;;  %s2681_s8 = inlined_call_operand.vmem [shape: f32[1,32], index: 8, kind: input, shape index: {}]   ;;  %s2682_s9 = inlined_call_operand.vmem [shape: f32[1,32], index: 9, kind: input, shape index: {}]   ;;  %s2683_s10 = inlined_call_operand.<no memory space> [shape: f32[1,1], index: 10, kind: input, shape index: {}]   ;;  %s2684_s11 = inlined_call_operand.vmem [shape: f32[2,128], index: 11, kind: output, shape index: {}]  }
   0x1   :  { %v16_v0 = vstv %s2683_s10 }
   0x2   :  { %17 = vst [vmem:[#allocation3] sm:$0x1] %v16_v0 }
   0x3 LB: > { %s2392_s20 = sadd.s32 4294967295, %s2302_s19   ;;  %p1949_p0 = scmp.ge.s32.totalorder %s2302_s19, 1  ;;  %s2302_s19 = sphi %s2386_s19, %s23_s19  }
   0x4   : > { %p373_p1 = scmp.lt.s32.totalorder %s2302_s19, 3 }
   0x6   : > { %p374_p2 = pnand %p1949_p0, %p373_p1 }
   0x7   : > { %p427_p3 = scmp.lt.s32.totalorder (!%p374_p2), %s2392_s20, 1  ;;  %p1959_p4 = scmp.ne.s32.totalorder (!%p374_p2), %s2392_s20, 0 }
   0x8   : > { %377 = sbr.rel (%p374_p2) target bundleno = 4664 (0x1238), region = 64 }
   0xf   : > { %s428_s10 = scalar_select %p427_p3, %s2392_s20, 1 }
  0x10   : > { %455 = sbr.rel (%p1959_p4) target bundleno = 23 (0x17), region = 68  ;;  %v456_v1 = vld [vmem:[%s2673_s0] sm:$0xff] (!%p1959_p4)  ;;  %vm458_vm0 = vcmask (!%p1959_p4), 261120   ;;  %v457_v2 = vld [vmem:[%s2673_s0 + $0x8] sm:$0xff] (!%p1959_p4) }
  0x11   : > { %s2002_s21 = sshll.u32 %s428_s10, 4  ;;  %s2005_s22 = sshll.u32 %s428_s10, 5  ;;  %459 = vst.msk [vmem:[#allocation2] sm:$0xff] (!%p1959_p4), %vm458_vm0, %v456_v1  ;;  %460 = vst.msk [vmem:[#allocation2 + $0x8] sm:$0xff] (!%p1959_p4), %vm458_vm0, %v457_v2 }
  0x12   : > { %s431_s25 = scalar_lea.vmem %s2675_s2, %s2002_s21  ;;  %s2404_s28 = scalar_lea.vmem %s2676_s3, %s2002_s21 }
  0x13   : > { %s2409_s12 = scalar_lea.vmem %s2677_s4, %s2002_s21  ;;  %s2414_s15 = scalar_lea.vmem %s2678_s5, %s2005_s22 }
  0x14   : > { %s1958_s16 = sshll.u32 %s428_s10, 3 }
  0x15   : > { %s450_s23 = scalar_lea.vmem %s2679_s6, %s1958_s16 }
  0x17 PF: > { %v2237_v3 = vld [vmem:[%s431_s25] sm:$0xff]   ;;  %v2304_v4 = vmov 0.0   ;;  %v2238_v5 = vld [vmem:[%s431_s25 + $0x8] sm:$0xff]   ;;  %vm2305_vm1 = vmmov 0   ;;  %vm485_vm2 = vcmask 261120   ;;  %v469_v9 = vlaneseq  ;;  %s2306_s10 = smov 96  }
  0x18   : > { %2055 = vmatprep.subr.bf16.mxu0 %v2304_v4  ;;  %2063 = vmatprep.subr.bf16.mxu1 %v2304_v4  ;;  %v2430_v6 = vld [vmem:[#allocation2] sm:$0xff]  ;;  %v2432_v7 = vld [vmem:[#allocation2 + $0x8] sm:$0xff]  ;;  %vm549_vm3 = vcmask 64512   ;;  %s2307_s13 = smov 64   ;;  %s2308_s14 = smov 88   ;;  %vm674_vm4 = vcmask 1043456  }
  0x19   : > { %2056 = vmatpush3.bf16.msra.mxu0 %v2237_v3  ;;  %2059 = vmatprep.mubr.msk.bf16.mxu0 %vm2305_vm1, %v2304_v4  ;;  %v464_v8 = vpack.c.bf16 %v2432_v7, %v2430_v6  ;;  %v2443_v10 = vshrl.u32 %v469_v9, 7  ;;  %v2446_v12 = vld [vmem:[%s450_s23] sm:$0xff]  ;;  %s2309_s16 = smov 120   ;;  %s2310_s17 = smov 56   ;;  %vm1452_vm5 = vcmask 130048   ;;  %vm1455_vm6 = vcmask 195584  }
  0x1a   : > { %2057 = vmatprep.subr.bf16.mxu0 %v2304_v4  ;;  %2065 = vmatprep.mubr.msk.bf16.mxu1 %vm2305_vm1, %v2304_v4  ;;  %v2470_v26 = vld [vmem:[%s2674_s1] ss:$0 sm:$0xff]  ;;  %v2476_v31 = vld [vmem:[%s2674_s1 + $0x1] ss:$0 sm:$0xff]  ;;  %s2311_s18 = smov 80   ;;  %s2312_s23 = smov 112  }
  0x1b   : > { %v471_v11 = vsub.s32 0, %v2443_v10  ;;  %s2313_s24 = smov 48   ;;  %s2314_s26 = smov 72   ;;  %vm1676_vm7 = vcmask 523264  }
  0x1c   : > { %s2315_s21 = smov 104   ;;  %s2316_s27 = smov 40  }
  0x1d   : > { %2058 = vmatpush3.bf16.msra.mxu0 %v2238_v5  ;;  %v472_v13 = vrot.slane %v2446_v12, %v471_v11  ;;  %s2318_s22 = smov 16   ;;  %s2319_s25 = smov 24  }
  0x1e   : > { %2069 = vmatprep.subr.bf16.mxu0 %v2304_v4  ;;  %p1992_p5 = scmp.ge.s32.totalorder %s2392_s20, 1 }
  0x20   : > { %2060 = vmatmul.mubr.msk.bf16.vlgmr.msra.gmra.mrb[0].mxu0 %vm485_vm2, %v464_v8 }
  0x21   : > { %2071 = vmatprep.mubr.msk.bf16.mxu0 %vm2305_vm1, %v2304_v4 }
  0xf3   : > { %v523_v14 = vpop.f32.mrb[0].mxu0 }
  0xf4   : > { %v524_v15 = vadd.f32 %v523_v14, %v472_v13  ;;  %v2061_v16 = vpop.f32.mrb[1].mxu0 }
  0xf5   : > { %v526_v17 = vpop.f32.mrb[2].mxu0 }
  0xf6   : > { %v2449_v18 = vpack.c.bf16 %v524_v15, %v524_v15  ;;  %v527_v19 = vadd.f32 %v526_v17, %v472_v13  ;;  %v2062_v20 = vpop.f32.mrb[3].mxu0 }
  0xf8   : > { %547 = vrot.lane.b32.xlu0 %v2449_v18, %s2306_s10  ;;  %v2452_v21 = vpack.c.bf16 %v527_v19, %v527_v19 }
  0xfc   : > { %597 = vrot.lane.b32.xlu0 %v2452_v21, %s2306_s10  ;;  %s2317_s10 = smov 8  }
 0x16a   : > { %v548_v22 = vpop.permute.xlu0 %547 }
 0x16b   : > { %v554_v23 = vsel %vm549_vm3, %v548_v22, 0 }
 0x16c   : > { %2064 = vmatpush3.bf16.xpose.msra.mxu1 %v554_v23 }
 0x16d   : > { %2075 = vmatprep.subr.bf16.mxu1 %v2304_v4 }
 0x16e   : > { %v598_v24 = vpop.permute.xlu0 %597 }
 0x16f   : > { %v603_v25 = vsel %vm549_vm3, %v598_v24, 0 }
 0x170   : > { %2070 = vmatpush3.bf16.xpose.msra.mxu0 %v603_v25 }
 0x171   : > { %2081 = vmatprep.subr.bf16.mxu0 %v2304_v4 }
 0x173   : > { %2066 = vmatmul.mubr.msk.bf16.vlgmr.msra.gmra.mrb[0].mxu1 %vm549_vm3, %v2449_v18 }
 0x174   : > { %2077 = vmatprep.mubr.msk.bf16.mxu1 %vm2305_vm1, %v2304_v4 }
 0x177   : > { %2072 = vmatmul.mubr.msk.bf16.vlgmr.msra.gmra.mrb[4].mxu0 %vm549_vm3, %v2452_v21 }
 0x178   : > { %2083 = vmatprep.mubr.msk.bf16.mxu0 %vm2305_vm1, %v2304_v4 }
 0x246   : > { %v590_v27 = vpop.f32.mrb[0].mxu1 }
 0x247   : > { %v591_v28 = vadd.f32 %v2470_v26, %v590_v27  ;;  %v2067_v29 = vpop.f32.mrb[1].mxu1 }
 0x248   : > { %v593_v30 = vpop.f32.mrb[2].mxu1 }
 0x249   : > { %v2068_v32 = vpop.f32.mrb[3].mxu1  ;;  %v645_v33 = vsel %vm549_vm3, %v591_v28, -inf }
 0x24a   : > { %646 = vmax.xlane.f32.xlu1 %v645_v33  ;;  %v639_v34 = vpop.f32.mrb[4].mxu0 }
 0x24b   : > { %v640_v35 = vadd.f32 %v2476_v31, %v639_v34  ;;  %v2073_v36 = vpop.f32.mrb[5].mxu0 }
 0x24c   : > { %v642_v37 = vpop.f32.mrb[6].mxu0 }
 0x24d   : > { %v2074_v38 = vpop.f32.mrb[7].mxu0  ;;  %v648_v39 = vsel %vm549_vm3, %v640_v35, -inf }
 0x24e   : > { %649 = vmax.xlane.f32.xlu1 %v648_v39 }
 0x25f   : > { %669 = vrot.lane.b32.xlu1 %v2449_v18, %s2307_s13 }
 0x263   : > { %718 = vrot.lane.b32.xlu1 %v2452_v21, %s2307_s13 }
 0x267   : > { %768 = vrot.lane.b32.xlu1 %v2449_v18, %s2308_s14 }
 0x2d7   : > { %v647_v40 = vpop.xlane.xlu1 %646 }
 0x2d8   : > { %v651_v41 = vsub.f32 %v591_v28, %v647_v40 }
 0x2da   : > { %v653_v42 = vmul.f32 1.442695, %v651_v41 }
 0x2db   : > { %v650_v43 = vpop.xlane.xlu1 %649 }
 0x2dc   : > { %2247 = vpow2.f32 %v653_v42  ;;  %v652_v44 = vsub.f32 %v640_v35, %v650_v43 }
 0x2de   : > { %v655_v45 = vmul.f32 1.442695, %v652_v44 }
 0x2df   : > { %v670_v46 = vpop.permute.xlu1 %669 }
 0x2e0   : > { %2249 = vpow2.f32 %v655_v45  ;;  %v676_v47 = vsel %vm674_vm4, %v670_v46, 0 }
 0x2e1   : > { %2076 = vmatpush3.bf16.msra.mxu1 %v676_v47 }
 0x2e2   : > { %2087 = vmatprep.subr.bf16.mxu1 %v2304_v4 }
 0x2e3   : > { %v719_v48 = vpop.permute.xlu1 %718 }
 0x2e4   : > { %v724_v49 = vsel %vm674_vm4, %v719_v48, 0 }
 0x2e5   : > { %2082 = vmatpush3.bf16.msra.mxu0 %v724_v49 }
 0x2e6   : > { %v2248_v50 = vpop.eup %2247  ;;  %2093 = vmatprep.subr.bf16.mxu0 %v2304_v4 }
 0x2e7   : > { %v657_v51 = vsel %vm549_vm3, %v2248_v50, 0.0  ;;  %v769_v54 = vpop.permute.xlu1 %768 }
 0x2e8   : > { %658 = vadd.xlane.f32.xlu0 %v657_v51  ;;  %v774_v61 = vsel %vm549_vm3, %v769_v54, 0 }
 0x2ea   : > { %v2250_v52 = vpop.eup %2249 }
 0x2eb   : > { %v660_v53 = vsel %vm549_vm3, %v2250_v52, 0.0 }
 0x2ec   : > { %661 = vadd.xlane.f32.xlu1 %v660_v53 }
 0x2fd   : > { %818 = vrot.lane.b32.xlu1 %v2452_v21, %s2308_s14 }
 0x2fe   : > { %766 = vrot.lane.b32.xlu0 %v2449_v18, %s2309_s16 }
 0x301   : > { %816 = vrot.lane.b32.xlu1 %v2452_v21, %s2309_s16 }
 0x375   : > { %v659_v55 = vpop.xlane.xlu0 %658 }
 0x376   : > { %2251 = vrcp.f32 %v659_v55 }
 0x379   : > { %v662_v56 = vpop.xlane.xlu1 %661  ;;  %v767_v2 = vpop.permute.xlu0 %766 }
 0x37a   : > { %2253 = vrcp.f32 %v662_v56 }
 0x37d   : > { %v819_v63 = vpop.permute.xlu1 %818 }
 0x37e   : > { %v824_v1 = vsel %vm549_vm3, %v819_v63, 0 }
 0x380   : > { %v2252_v57 = vpop.eup %2251 }
 0x381   : > { %v665_v58 = vmul.f32 %v2252_v57, %v2248_v50  ;;  %v817_v3 = vpop.permute.xlu1 %816 }
 0x383   : > { %v667_v59 = vpack.c.bf16 %v665_v58, %v665_v58 }
 0x384   : > { %v2254_v60 = vpop.eup %2253 }
 0x385   : > { %v666_v62 = vmul.f32 %v2254_v60, %v2250_v52  ;;  %2078 = vmatmul.mubr.msk.bf16.vlgmr.msra.gmra.mrb[4].mxu1 %vm549_vm3, %v667_v59 }
 0x386   : > { %2088 = vmatpush3.bf16.xpose.msra.mxu1 %v774_v61  ;;  %2089 = vmatprep.mubr.msk.bf16.mxu1 %vm2305_vm1, %v2304_v4 }
 0x387   : > { %v668_v0 = vpack.c.bf16 %v666_v62, %v666_v62  ;;  %2099 = vmatprep.subr.bf16.mxu1 %v2304_v4 }
 0x389   : > { %2084 = vmatmul.mubr.msk.bf16.vlgmr.msra.gmra.mrb[8].mxu0 %vm549_vm3, %v668_v0 }
 0x38a   : > { %2094 = vmatpush3.bf16.xpose.msra.mxu0 %v824_v1  ;;  %2095 = vmatprep.mubr.msk.bf16.mxu0 %vm2305_vm1, %v2304_v4 }
 0x38b   : > { %2105 = vmatprep.subr.bf16.mxu0 %v2304_v4 }
 0x38d   : > { %2090 = vmatmul.mubr.msk.bf16.vlgmr.msra.gmra.mrb[8].mxu1 %vm549_vm3, %v767_v2 }
 0x38e   : > { %2101 = vmatprep.mubr.msk.bf16.mxu1 %vm2305_vm1, %v2304_v4 }
 0x391   : > { %2096 = vmatmul.mubr.msk.bf16.vlgmr.msra.gmra.mrb[12].mxu0 %vm549_vm3, %v817_v3 }
 0x392   : > { %2107 = vmatprep.mubr.msk.bf16.mxu0 %vm2305_vm1, %v2304_v4 }
 0x458   : > { %v2509_v5 = vpop.f32.mrb[4].mxu1 }
 0x459   : > { %v2079_v8 = vpop.f32.mrb[5].mxu1 }
 0x45a   : > { %v715_v9 = vpop.f32.mrb[6].mxu1 }
 0x45b   : > { %v2080_v11 = vpop.f32.mrb[7].mxu1 }
 0x45c   : > { %v2511_v13 = vpop.f32.mrb[8].mxu0 }
 0x45d   : > { %v2085_v14 = vpop.f32.mrb[9].mxu0 }
 0x45e   : > { %v763_v15 = vpop.f32.mrb[10].mxu0 }
 0x45f   : > { %v2086_v16 = vpop.f32.mrb[11].mxu0 }
 0x460   : > { %v810_v17 = vpop.f32.mrb[8].mxu1 }
 0x461   : > { %v811_v19 = vadd.f32 %v2470_v26, %v810_v17  ;;  %v2091_v20 = vpop.f32.mrb[9].mxu1 }
 0x462   : > { %v813_v22 = vpop.f32.mrb[10].mxu1 }
 0x463   : > { %v2092_v23 = vpop.f32.mrb[11].mxu1  ;;  %v866_v24 = vsel %vm549_vm3, %v811_v19, -inf }
 0x464   : > { %867 = vmax.xlane.f32.xlu1 %v866_v24  ;;  %v860_v25 = vpop.f32.mrb[12].mxu0 }
 0x465   : > { %v861_v27 = vadd.f32 %v2476_v31, %v860_v25  ;;  %v2097_v28 = vpop.f32.mrb[13].mxu0 }
 0x466   : > { %v863_v29 = vpop.f32.mrb[14].mxu0 }
 0x467   : > { %v2098_v30 = vpop.f32.mrb[15].mxu0  ;;  %v869_v32 = vsel %vm549_vm3, %v861_v27, -inf }
 0x468   : > { %870 = vmax.xlane.f32.xlu0 %v869_v32 }
 0x475   : > { %890 = vrot.lane.b32.xlu1 %v2449_v18, %s2310_s17 }
 0x479   : > { %988 = vrot.lane.b32.xlu1 %v2449_v18, %s2311_s18 }
 0x47e   : > { %938 = vrot.lane.b32.xlu0 %v2452_v21, %s2310_s17 }
 0x482   : > { %986 = vrot.lane.b32.xlu0 %v2449_v18, %s2312_s23 }
 0x4f1   : > { %v868_v33 = vpop.xlane.xlu1 %867 }
 0x4f2   : > { %v872_v34 = vsub.f32 %v811_v19, %v868_v33 }
 0x4f4   : > { %v874_v35 = vmul.f32 1.442695, %v872_v34 }
 0x4f5   : > { %v891_v36 = vpop.permute.xlu1 %890  ;;  %v871_v37 = vpop.xlane.xlu0 %870 }
 0x4f6   : > { %2255 = vpow2.f32 %v874_v35  ;;  %v896_v38 = vsel %vm674_vm4, %v891_v36, 0  ;;  %v873_v39 = vsub.f32 %v861_v27, %v871_v37 }
 0x4f7   : > { %2100 = vmatpush3.bf16.msra.mxu1 %v896_v38 }
 0x4f8   : > { %v876_v40 = vmul.f32 1.442695, %v873_v39  ;;  %2111 = vmatprep.subr.bf16.mxu1 %v2304_v4 }
 0x4f9   : > { %v939_v41 = vpop.permute.xlu0 %938  ;;  %v989_v47 = vpop.permute.xlu1 %988 }
 0x4fa   : > { %2257 = vpow2.f32 %v876_v40  ;;  %v944_v42 = vsel %vm674_vm4, %v939_v41, 0  ;;  %v994_v54 = vsel %vm549_vm3, %v989_v47, 0 }
 0x4fb   : > { %2106 = vmatpush3.bf16.msra.mxu0 %v944_v42 }
 0x4fc   : > { %2117 = vmatprep.subr.bf16.mxu0 %v2304_v4 }
 0x4fd   : > { %v987_v59 = vpop.permute.xlu0 %986 }
 0x500   : > { %v2256_v43 = vpop.eup %2255 }
 0x501   : > { %v878_v44 = vsel %vm549_vm3, %v2256_v43, 0.0 }
 0x502   : > { %879 = vadd.xlane.f32.xlu1 %v878_v44 }
 0x504   : > { %v2258_v45 = vpop.eup %2257 }
 0x505   : > { %v881_v46 = vsel %vm549_vm3, %v2258_v45, 0.0 }
 0x506   : > { %882 = vadd.xlane.f32.xlu1 %v881_v46 }
 0x517   : > { %1038 = vrot.lane.b32.xlu1 %v2452_v21, %s2311_s18 }
 0x51b   : > { %1036 = vrot.lane.b32.xlu1 %v2452_v21, %s2312_s23 }
 0x58f   : > { %v880_v48 = vpop.xlane.xlu1 %879 }
 0x590   : > { %2259 = vrcp.f32 %v880_v48 }
 0x593   : > { %v883_v49 = vpop.xlane.xlu1 %882 }
 0x594   : > { %2261 = vrcp.f32 %v883_v49 }
 0x597   : > { %v1039_v56 = vpop.permute.xlu1 %1038 }
 0x598   : > { %v1044_v58 = vsel %vm549_vm3, %v1039_v56, 0 }
 0x59a   : > { %v2260_v50 = vpop.eup %2259 }
 0x59b   : > { %v886_v51 = vmul.f32 %v2260_v50, %v2256_v43  ;;  %v1037_v60 = vpop.permute.xlu1 %1036 }
 0x59d   : > { %v888_v52 = vpack.c.bf16 %v886_v51, %v886_v51 }
 0x59e   : > { %v2262_v53 = vpop.eup %2261 }
 0x59f   : > { %v887_v55 = vmul.f32 %v2262_v53, %v2258_v45  ;;  %2102 = vmatmul.mubr.msk.bf16.vlgmr.msra.gmra.mrb[12].mxu1 %vm549_vm3, %v888_v52 }
 0x5a0   : > { %2112 = vmatpush3.bf16.xpose.msra.mxu1 %v994_v54  ;;  %2113 = vmatprep.mubr.msk.bf16.mxu1 %vm2305_vm1, %v2304_v4 }
 0x5a1   : > { %v889_v57 = vpack.c.bf16 %v887_v55, %v887_v55  ;;  %2123 = vmatprep.subr.bf16.mxu1 %v2304_v4 }
 0x5a3   : > { %2108 = vmatmul.mubr.msk.bf16.vlgmr.msra.gmra.mrb[16].mxu0 %vm549_vm3, %v889_v57 }
 0x5a4   : > { %2118 = vmatpush3.bf16.xpose.msra.mxu0 %v1044_v58  ;;  %2119 = vmatprep.mubr.msk.bf16.mxu0 %vm2305_vm1, %v2304_v4 }
 0x5a5   : > { %2129 = vmatprep.subr.bf16.mxu0 %v2304_v4 }
 0x5a7   : > { %2114 = vmatmul.mubr.msk.bf16.vlgmr.msra.gmra.mrb[16].mxu1 %vm549_vm3, %v987_v59 }
 0x5a8   : > { %2125 = vmatprep.mubr.msk.bf16.mxu1 %vm2305_vm1, %v2304_v4 }
 0x5ab   : > { %2120 = vmatmul.mubr.msk.bf16.vlgmr.msra.gmra.mrb[20].mxu0 %vm549_vm3, %v1037_v60 }
 0x5ac   : > { %2131 = vmatprep.mubr.msk.bf16.mxu0 %vm2305_vm1, %v2304_v4 }
 0x672   : > { %v2545_v61 = vpop.f32.mrb[12].mxu1 }
 0x673   : > { %v2103_v62 = vpop.f32.mrb[13].mxu1 }
 0x674   : > { %v935_v63 = vpop.f32.mrb[14].mxu1 }
 0x675   : > { %v2104_v0 = vpop.f32.mrb[15].mxu1 }
 0x676   : > { %v2547_v1 = vpop.f32.mrb[16].mxu0 }
 0x677   : > { %v2222_v2 = vpack.i.bf16 %v2547_v1, %v2545_v61  ;;  %v2109_v3 = vpop.f32.mrb[17].mxu0 }
 0x678   : > { %v983_v8 = vpop.f32.mrb[18].mxu0 }
 0x679   : > { %v2110_v9 = vpop.f32.mrb[19].mxu0 }
 0x67a   : > { %v1030_v11 = vpop.f32.mrb[16].mxu1 }
 0x67b   : > { %v1031_v14 = vadd.f32 %v2470_v26, %v1030_v11  ;;  %v2115_v15 = vpop.f32.mrb[17].mxu1 }
 0x67c   : > { %v1033_v16 = vpop.f32.mrb[18].mxu1 }
 0x67d   : > { %v2116_v17 = vpop.f32.mrb[19].mxu1  ;;  %v1086_v19 = vsel %vm549_vm3, %v1031_v14, -inf }
 0x67e   : > { %1087 = vmax.xlane.f32.xlu0 %v1086_v19  ;;  %v1080_v20 = vpop.f32.mrb[20].mxu0 }
 0x67f   : > { %v1081_v22 = vadd.f32 %v2476_v31, %v1080_v20  ;;  %v2121_v23 = vpop.f32.mrb[21].mxu0 }
 0x680   : > { %v1083_v24 = vpop.f32.mrb[22].mxu0 }
 0x681   : > { %v2122_v25 = vpop.f32.mrb[23].mxu0  ;;  %v1089_v27 = vsel %vm549_vm3, %v1081_v22, -inf }
 0x682   : > { %1090 = vmax.xlane.f32.xlu1 %v1089_v27 }
 0x693   : > { %1110 = vrot.lane.b32.xlu1 %v2449_v18, %s2313_s24 }
 0x697   : > { %1208 = vrot.lane.b32.xlu1 %v2449_v18, %s2314_s26 }
 0x69b   : > { %1258 = vrot.lane.b32.xlu1 %v2452_v21, %s2314_s26 }
 0x69f   : > { %1256 = vrot.lane.b32.xlu1 %v2452_v21, %s2315_s21 }
 0x70b   : > { %v1088_v28 = vpop.xlane.xlu0 %1087 }
 0x70c   : > { %v1092_v29 = vsub.f32 %v1031_v14, %v1088_v28 }
 0x70e   : > { %v1094_v30 = vmul.f32 1.442695, %v1092_v29 }
 0x70f   : > { %v1091_v32 = vpop.xlane.xlu1 %1090 }
 0x710   : > { %2263 = vpow2.f32 %v1094_v30  ;;  %v1093_v33 = vsub.f32 %v1081_v22, %v1091_v32 }
 0x712   : > { %v1096_v34 = vmul.f32 1.442695, %v1093_v33 }
 0x713   : > { %v1111_v35 = vpop.permute.xlu1 %1110 }
 0x714   : > { %2265 = vpow2.f32 %v1096_v34  ;;  %v1116_v36 = vsel %vm674_vm4, %v1111_v35, 0 }
 0x715   : > { %2124 = vmatpush3.bf16.msra.mxu1 %v1116_v36 }
 0x716   : > { %2135 = vmatprep.subr.bf16.mxu1 %v2304_v4 }
 0x717   : > { %v1209_v46 = vpop.permute.xlu1 %1208 }
 0x718   : > { %v1214_v50 = vsel %vm549_vm3, %v1209_v46, 0 }
 0x71a   : > { %v2264_v37 = vpop.eup %2263 }
 0x71b   : > { %v1098_v38 = vsel %vm549_vm3, %v2264_v37, 0.0  ;;  %v1259_v52 = vpop.permute.xlu1 %1258 }
 0x71c   : > { %1099 = vadd.xlane.f32.xlu0 %v1098_v38  ;;  %v1264_v54 = vsel %vm549_vm3, %v1259_v52, 0 }
 0x71e   : > { %v2266_v39 = vpop.eup %2265 }
 0x71f   : > { %v1101_v40 = vsel %vm549_vm3, %v2266_v39, 0.0  ;;  %v1257_v56 = vpop.permute.xlu1 %1256 }
 0x720   : > { %1102 = vadd.xlane.f32.xlu0 %v1101_v40 }
 0x736   : > { %1158 = vrot.lane.b32.xlu0 %v2452_v21, %s2313_s24 }
 0x73a   : > { %1206 = vrot.lane.b32.xlu0 %v2449_v18, %s2315_s21 }
 0x7a9   : > { %v1100_v41 = vpop.xlane.xlu0 %1099 }
 0x7aa   : > { %2267 = vrcp.f32 %v1100_v41 }
 0x7ad   : > { %v1103_v42 = vpop.xlane.xlu0 %1102 }
 0x7ae   : > { %2269 = vrcp.f32 %v1103_v42 }
 0x7b1   : > { %v1159_v43 = vpop.permute.xlu0 %1158 }
 0x7b2   : > { %v1164_v44 = vsel %vm674_vm4, %v1159_v43, 0  ;;  %v2239_v43 = vld [vmem:[%s2404_s28] sm:$0xff]  }
 0x7b3   : > { %2130 = vmatpush3.bf16.msra.mxu0 %v1164_v44  ;;  %v2240_v44 = vld [vmem:[%s2404_s28 + $0x8] sm:$0xff]  }
 0x7b4   : > { %v2268_v45 = vpop.eup %2267  ;;  %2141 = vmatprep.subr.bf16.mxu0 %v2304_v4 }
 0x7b5   : > { %v1106_v47 = vmul.f32 %v2268_v45, %v2264_v37  ;;  %v1207_v55 = vpop.permute.xlu0 %1206 }
 0x7b7   : > { %v1108_v48 = vpack.c.bf16 %v1106_v47, %v1106_v47 }
 0x7b8   : > { %v2270_v49 = vpop.eup %2269 }
 0x7b9   : > { %v1107_v51 = vmul.f32 %v2270_v49, %v2266_v39  ;;  %2126 = vmatmul.mubr.msk.bf16.vlgmr.msra.gmra.mrb[20].mxu1 %vm549_vm3, %v1108_v48 }
 0x7ba   : > { %2136 = vmatpush3.bf16.xpose.msra.mxu1 %v1214_v50  ;;  %2137 = vmatprep.mubr.msk.bf16.mxu1 %vm2305_vm1, %v2304_v4 }
 0x7bb   : > { %v1109_v53 = vpack.c.bf16 %v1107_v51, %v1107_v51  ;;  %2147 = vmatprep.subr.bf16.mxu1 %v2304_v4 }
 0x7bd   : > { %2132 = vmatmul.mubr.msk.bf16.vlgmr.msra.gmra.mrb[24].mxu0 %vm549_vm3, %v1109_v53 }
 0x7be   : > { %2142 = vmatpush3.bf16.xpose.msra.mxu0 %v1264_v54  ;;  %2143 = vmatprep.mubr.msk.bf16.mxu0 %vm2305_vm1, %v2304_v4 }
 0x7bf   : > { %2153 = vmatprep.subr.bf16.mxu0 %v2304_v4 }
 0x7c1   : > { %2138 = vmatmul.mubr.msk.bf16.vlgmr.msra.gmra.mrb[24].mxu1 %vm549_vm3, %v1207_v55 }
 0x7c2   : > { %2149 = vmatprep.mubr.msk.bf16.mxu1 %vm2305_vm1, %v2304_v4 }
 0x7c5   : > { %2144 = vmatmul.mubr.msk.bf16.vlgmr.msra.gmra.mrb[28].mxu0 %vm549_vm3, %v1257_v56 }
 0x7c6   : > { %2155 = vmatprep.mubr.msk.bf16.mxu0 %vm2305_vm1, %v2304_v4 }
 0x88c   : > { %v1152_v57 = vpop.f32.mrb[20].mxu1 }
 0x88d   : > { %v2127_v58 = vpop.f32.mrb[21].mxu1 }
 0x88e   : > { %v1155_v59 = vpop.f32.mrb[22].mxu1 }
 0x88f   : > { %v2128_v60 = vpop.f32.mrb[23].mxu1 }
 0x890   : > { %v1200_v62 = vpop.f32.mrb[24].mxu0 }
 0x891   : > { %v2227_v63 = vpack.i.bf16 %v1200_v62, %v1152_v57  ;;  %v2133_v0 = vpop.f32.mrb[25].mxu0 }
 0x892   : > { %v1203_v3 = vpop.f32.mrb[26].mxu0 }
 0x893   : > { %v2134_v8 = vpop.f32.mrb[27].mxu0 }
 0x894   : > { %v1250_v9 = vpop.f32.mrb[24].mxu1 }
 0x895   : > { %v1251_v11 = vadd.f32 %v2470_v26, %v1250_v9  ;;  %v2139_v14 = vpop.f32.mrb[25].mxu1 }
 0x896   : > { %v1253_v15 = vpop.f32.mrb[26].mxu1 }
 0x897   : > { %v2140_v16 = vpop.f32.mrb[27].mxu1  ;;  %v1306_v17 = vsel %vm549_vm3, %v1251_v11, -inf }
 0x898   : > { %1307 = vmax.xlane.f32.xlu0 %v1306_v17  ;;  %v1300_v19 = vpop.f32.mrb[28].mxu0  ;;  %v1465_v16 = vsub.s32 1, %v2443_v10 }
 0x899   : > { %v1301_v20 = vadd.f32 %v2476_v31, %v1300_v19  ;;  %v2145_v22 = vpop.f32.mrb[29].mxu0 }
 0x89a   : > { %v1303_v23 = vpop.f32.mrb[30].mxu0  ;;  %v1466_v17 = vrot.slane %v2446_v12, %v1465_v16 }
 0x89b   : > { %v2146_v24 = vpop.f32.mrb[31].mxu0  ;;  %v1309_v25 = vsel %vm549_vm3, %v1301_v20, -inf }
 0x89c   : > { %1310 = vmax.xlane.f32.xlu1 %v1309_v25 }
 0x8ad   : > { %1330 = vrot.lane.b32.xlu1 %v2449_v18, %s2316_s27 }
 0x8b1   : > { %2223 = vrot.lane.b32.xlu1 %v2222_v2, %s2317_s10 }
 0x8b5   : > { %2228 = vrot.lane.b32.xlu1 %v2227_v63, %s2318_s22 }
 0x925   : > { %v1308_v26 = vpop.xlane.xlu0 %1307 }
 0x926   : > { %v1312_v27 = vsub.f32 %v1251_v11, %v1308_v26 }
 0x928   : > { %v1314_v28 = vmul.f32 1.442695, %v1312_v27 }
 0x929   : > { %v1311_v31 = vpop.xlane.xlu1 %1310 }
 0x92a   : > { %2271 = vpow2.f32 %v1314_v28  ;;  %v1313_v29 = vsub.f32 %v1301_v20, %v1311_v31 }
 0x92c   : > { %v1316_v30 = vmul.f32 1.442695, %v1313_v29 }
 0x92d   : > { %v1331_v32 = vpop.permute.xlu1 %1330 }
 0x92e   : > { %2273 = vpow2.f32 %v1316_v30  ;;  %v1336_v33 = vsel %vm674_vm4, %v1331_v32, 0 }
 0x92f   : > { %2148 = vmatpush3.bf16.msra.mxu1 %v1336_v33 }
 0x930   : > { %2159 = vmatprep.subr.bf16.mxu1 %v2304_v4 }
 0x931   : > { %v2224_v54 = vpop.permute.xlu1 %2223 }
 0x932   : > { %v2226_v56 = vunpack.i.h.bf16 %v2224_v54  ;;  %v2225_v57 = vunpack.i.l.bf16 %v2224_v54  ;;  %v2245_v54 = vld [vmem:[%s2414_s15 + $0x10] sm:$0xff]  }
 0x934   : > { %v2272_v18 = vpop.eup %2271  ;;  %v1451_v62 = vsel %vm549_vm3, %v2511_v13, %v2226_v56  ;;  %v1450_v63 = vsel %vm549_vm3, %v2509_v5, %v2225_v57  ;;  %v1571_v56 = vsub.s32 4, %v2443_v10 }
 0x935   : > { %v1318_v61 = vsel %vm549_vm3, %v2272_v18, 0.0  ;;  %v2229_v55 = vpop.permute.xlu1 %2228 }
 0x936   : > { %1319 = vadd.xlane.f32.xlu0 %v1318_v61  ;;  %v2231_v58 = vunpack.i.h.bf16 %v2229_v55  ;;  %v2230_v59 = vunpack.i.l.bf16 %v2229_v55  ;;  %v2246_v55 = vld [vmem:[%s2414_s15 + $0x18] sm:$0xff]   ;;  %v1572_v57 = vrot.slane %v2446_v12, %v1571_v56 }
 0x938   : > { %v2274_v1 = vpop.eup %2273  ;;  %v1453_v8 = vsel %vm1452_vm5, %v1450_v63, %v2230_v59  ;;  %v1454_v9 = vsel %vm1452_vm5, %v1451_v62, %v2231_v58 }
 0x939   : > { %v1321_v2 = vsel %vm549_vm3, %v2274_v1, 0.0 }
 0x93a   : > { %1322 = vadd.xlane.f32.xlu0 %v1321_v2  ;;  %v2242_v2 = vld [vmem:[%s2409_s12 + $0x8] sm:$0xff]  }
 0x950   : > { %1378 = vrot.lane.b32.xlu0 %v2452_v21, %s2316_s27 }
 0x9c3   : > { %v1320_v34 = vpop.xlane.xlu0 %1319 }
 0x9c4   : > { %2275 = vrcp.f32 %v1320_v34 }
 0x9c7   : > { %v1323_v35 = vpop.xlane.xlu0 %1322 }
 0x9c8   : > { %2277 = vrcp.f32 %v1323_v35 }
 0x9cb   : > { %v1379_v36 = vpop.permute.xlu0 %1378 }
 0x9cc   : > { %v1384_v37 = vsel %vm674_vm4, %v1379_v36, 0 }
 0x9cd   : > { %2154 = vmatpush3.bf16.msra.mxu0 %v1384_v37 }
 0x9ce   : > { %v2276_v38 = vpop.eup %2275  ;;  %2167 = vmatprep.subr.bf16.mxu0 %v2304_v4 }
 0x9cf   : > { %v1326_v39 = vmul.f32 %v2276_v38, %v2272_v18 }
 0x9d1   : > { %v1328_v40 = vpack.c.bf16 %v1326_v39, %v1326_v39 }
 0x9d2   : > { %v2278_v41 = vpop.eup %2277 }
 0x9d3   : > { %v1327_v42 = vmul.f32 %v2278_v41, %v2274_v1  ;;  %2150 = vmatmul.mubr.msk.bf16.vlgmr.msra.gmra.mrb[28].mxu1 %vm549_vm3, %v1328_v40  ;;  %v1554_v40 = vsub.s32 2, %v2443_v10 }
 0x9d4   : > { %2163 = vmatprep.mubr.msk.bf16.mxu1 %vm2305_vm1, %v2304_v4  ;;  %2160 = vmatpush3.bf16.msra.mxu1 %v2239_v43 }
 0x9d5   : > { %v1329_v21 = vpack.c.bf16 %v1327_v42, %v1327_v42  ;;  %2161 = vmatprep.subr.bf16.mxu1 %v2304_v4  ;;  %v1555_v41 = vrot.slane %v2446_v12, %v1554_v40  ;;  %v1560_v42 = vsub.s32 3, %v2443_v10 }
 0x9d7   : > { %2156 = vmatmul.mubr.msk.bf16.vlgmr.msra.gmra.mrb[32].mxu0 %vm549_vm3, %v1329_v21 }
 0x9d8   : > { %2171 = vmatprep.mubr.msk.bf16.mxu0 %vm2305_vm1, %v2304_v4  ;;  %2162 = vmatpush3.bf16.msra.mxu1 %v2240_v44 }
 0x9d9   : > { %2175 = vmatprep.subr.bf16.mxu1 %v2304_v4 }
 0xaa6   : > { %v1372_v45 = vpop.f32.mrb[28].mxu1 }
 0xaa7   : > { %v2151_v46 = vpop.f32.mrb[29].mxu1 }
 0xaa8   : > { %v1375_v47 = vpop.f32.mrb[30].mxu1 }
 0xaa9   : > { %v2152_v48 = vpop.f32.mrb[31].mxu1  ;;  %v1561_v47 = vrot.slane %v2446_v12, %v1560_v42  ;;  %v1751_v42 = vsub.s32 6, %v2443_v10 }
 0xaaa   : > { %v1420_v49 = vpop.f32.mrb[32].mxu0 }
 0xaab   : > { %v2232_v50 = vpack.i.bf16 %v1420_v49, %v1372_v45  ;;  %v2157_v51 = vpop.f32.mrb[33].mxu0 }
 0xaac   : > { %v1423_v52 = vpop.f32.mrb[34].mxu0 }
 0xaad   : > { %2233 = vrot.lane.b32.xlu0 %v2232_v50, %s2319_s25  ;;  %v2158_v53 = vpop.f32.mrb[35].mxu0  ;;  %v2243_v52 = vld [vmem:[%s2414_s15] sm:$0xff]  }
 0xaae   : > { %v2244_v53 = vld [vmem:[%s2414_s15 + $0x8] sm:$0xff]  }
 0xb1f   : > { %v2234_v60 = vpop.permute.xlu0 %2233 }
 0xb20   : > { %v2236_v0 = vunpack.i.h.bf16 %v2234_v60  ;;  %v2235_v3 = vunpack.i.l.bf16 %v2234_v60 }
 0xb22   : > { %v1457_v11 = vsel %vm1455_vm6, %v1454_v9, %v2236_v0  ;;  %v1456_v14 = vsel %vm1455_vm6, %v1453_v8, %v2235_v3 }
 0xb23   : > { %v1458_v15 = vpack.c.bf16 %v1457_v11, %v1456_v14 }
 0xb25   : > { %2164 = vmatmul.mubr.msk.bf16.vlgmr.msra.gmra.mrb[32].mxu1 %vm485_vm2, %v1458_v15 }
 0xb26   : > { %2183 = vmatprep.mubr.msk.bf16.mxu1 %vm2305_vm1, %v2304_v4  ;;  %2176 = vmatpush3.bf16.msra.mxu1 %v2243_v52 }
 0xb27   : > { %2177 = vmatprep.subr.bf16.mxu1 %v2304_v4 }
 0xb2a   : > { %2178 = vmatpush3.bf16.msra.mxu1 %v2244_v53 }
 0xb2b   : > { %2179 = vmatprep.subr.bf16.mxu1 %v2304_v4 }
 0xb2e   : > { %2180 = vmatpush3.bf16.msra.mxu1 %v2245_v54 }
 0xb2f   : > { %2181 = vmatprep.subr.bf16.mxu1 %v2304_v4 }
 0xb32   : > { %2182 = vmatpush3.bf16.msra.mxu1 %v2246_v55 }
 0xbf8   : > { %v1516_v13 = vpop.f32.mrb[32].mxu1 }
 0xbf9   : > { %v1517_v19 = vadd.f32 %v1516_v13, %v1466_v17  ;;  %v2165_v20 = vpop.f32.mrb[33].mxu1 }
 0xbfa   : > { %v1519_v5 = vpop.f32.mrb[34].mxu1  ;;  %v1650_v20 = vsub.s32 5, %v2443_v10 }
 0xbfb   : > { %v1520_v22 = vadd.f32 %v1519_v5, %v1466_v17  ;;  %v2166_v23 = vpop.f32.mrb[35].mxu1  ;;  %v1523_v24 = vadd.f32 %v1517_v19, %v2430_v6 }
 0xbfc   : > { %v1651_v5 = vrot.slane %v2446_v12, %v1650_v20 }
 0xbfd   : > { %v1525_v25 = vsel %vm485_vm2, %v1523_v24, 0.0  ;;  %v1524_v26 = vadd.f32 %v1520_v22, %v2432_v7  ;;  %v2241_v7 = vld [vmem:[%s2409_s12] sm:$0xff]  }
 0xbfe   : > { %1526 = vadd.xlane.f32.xlu1 %v1525_v25  ;;  %2168 = vmatpush3.bf16.msra.mxu0 %v2241_v7 }
 0xbff   : > { %v1528_v27 = vsel %vm485_vm2, %v1524_v26, 0.0  ;;  %2169 = vmatprep.subr.bf16.mxu0 %v2304_v4 }
 0xc00   : > { %1529 = vadd.xlane.f32.xlu0 %v1528_v27 }
 0xc02   : > { %2170 = vmatpush3.bf16.msra.mxu0 %v2242_v2 }
 0xc8b   : > { %v1527_v28 = vpop.xlane.xlu1 %1526 }
 0xc8c   : > { %v1532_v31 = vmul.f32 0.03125, %v1527_v28 }
 0xc8d   : > { %v1530_v29 = vpop.xlane.xlu0 %1529 }
 0xc8e   : > { %v1534_v30 = vsub.f32 %v1523_v24, %v1532_v31  ;;  %v1533_v32 = vmul.f32 0.03125, %v1530_v29 }
 0xc90   : > { %v1535_v33 = vsub.f32 %v1524_v26, %v1533_v32  ;;  %v1536_v18 = vmul.f32 %v1534_v30, %v1534_v30 }
 0xc92   : > { %v1538_v61 = vsel %vm485_vm2, %v1536_v18, 0.0  ;;  %v1537_v6 = vmul.f32 %v1535_v33, %v1535_v33 }
 0xc93   : > { %1539 = vadd.xlane.f32.xlu0 %v1538_v61 }
 0xc94   : > { %v1541_v1 = vsel %vm485_vm2, %v1537_v6, 0.0 }
 0xc95   : > { %1542 = vadd.xlane.f32.xlu1 %v1541_v1 }
 0xd20   : > { %v1540_v34 = vpop.xlane.xlu0 %1539 }
 0xd21   : > { %v1544_v35 = vmul.f32 0.03125, %v1540_v34 }
 0xd22   : > { %v1543_v36 = vpop.xlane.xlu1 %1542 }
 0xd23   : > { %v1546_v37 = vadd.f32 1e-12, %v1544_v35  ;;  %v1545_v38 = vmul.f32 0.03125, %v1543_v36 }
 0xd25   : > { %2279 = vrsqrt.f32 %v1546_v37  ;;  %v1547_v39 = vadd.f32 1e-12, %v1545_v38 }
 0xd27   : > { %2281 = vrsqrt.f32 %v1547_v39 }
 0xd2f   : > { %v2280_v21 = vpop.eup %2279 }
 0xd30   : > { %v1550_v43 = vmul.f32 %v2280_v21, %v1534_v30  ;;  %v1757_v21 = vsub.s32 7, %v2443_v10 }
 0xd31   : > { %v2282_v44 = vpop.eup %2281 }
 0xd32   : > { %v1556_v45 = vmul.f32 %v1555_v41, %v1550_v43  ;;  %v1551_v46 = vmul.f32 %v2282_v44, %v1535_v33  ;;  %v1752_v43 = vrot.slane %v2446_v12, %v1751_v42 }
 0xd34   : > { %v1557_v48 = vmul.f32 %v1555_v41, %v1551_v46  ;;  %v1562_v49 = vadd.f32 %v1561_v47, %v1556_v45  ;;  %v1758_v45 = vrot.slane %v2446_v12, %v1757_v21 }
 0xd36   : > { %v1563_v50 = vadd.f32 %v1561_v47, %v1557_v48 }
 0xd38   : > { %v1564_v51 = vpack.c.bf16 %v1563_v50, %v1562_v49 }
 0xd3a   : > { %2172 = vmatmul.mubr.msk.bf16.vlgmr.msra.gmra.mrb[36].mxu0 %vm485_vm2, %v1564_v51 }
 0xe0d   : > { %v1622_v58 = vpop.f32.mrb[36].mxu0 }
 0xe0e   : > { %v1623_v59 = vadd.f32 %v1622_v58, %v1572_v57  ;;  %v2173_v60 = vpop.f32.mrb[37].mxu0 }
 0xe0f   : > { %v1625_v62 = vpop.f32.mrb[38].mxu0 }
 0xe10   : > { %v1631_v63 = vmul.f32 0.70710677, %v1623_v59  ;;  %v1626_v0 = vadd.f32 %v1625_v62, %v1572_v57  ;;  %v2174_v3 = vpop.f32.mrb[39].mxu0  ;;  %v1629_v4 = vmul.f32 0.5, %v1623_v59 }
 0xe12   : > { %2283 = verf.f32 %v1631_v63  ;;  %v1632_v8 = vmul.f32 0.70710677, %v1626_v0  ;;  %v1630_v15 = vmul.f32 0.5, %v1626_v0 }
 0xe14   : > { %2285 = verf.f32 %v1632_v8 }
 0xe1c   : > { %v2284_v9 = vpop.eup %2283 }
 0xe1d   : > { %v1635_v11 = vadd.f32 1.0, %v2284_v9 }
 0xe1e   : > { %v2286_v14 = vpop.eup %2285 }
 0xe1f   : > { %v1636_v16 = vadd.f32 1.0, %v2286_v14  ;;  %v1637_v17 = vmul.f32 %v1635_v11, %v1629_v4 }
 0xe21   : > { %v1638_v13 = vmul.f32 %v1636_v16, %v1630_v15 }
 0xe23   : > { %v1639_v19 = vpack.c.bf16 %v1638_v13, %v1637_v17 }
 0xe25   : > { %2184 = vmatmul.mubr.msk.bf16.vlgmr.msra.gmra.mrb[36].mxu1 %vm1676_vm7, %v1639_v19 }
 0xef8   : > { %v1714_v22 = vpop.f32.mrb[36].mxu1 }
 0xef9   : > { %v1715_v23 = vadd.f32 %v1714_v22, %v1651_v5  ;;  %v2185_v24 = vpop.f32.mrb[37].mxu1 }
 0xefa   : > { %v1717_v25 = vpop.f32.mrb[38].mxu1 }
 0xefb   : > { %v1718_v26 = vadd.f32 %v1717_v25, %v1651_v5  ;;  %v2186_v27 = vpop.f32.mrb[39].mxu1  ;;  %v1721_v28 = vadd.f32 %v1715_v23, %v1562_v49 }
 0xefd   : > { %v1723_v31 = vsel %vm485_vm2, %v1721_v28, 0.0  ;;  %v1722_v29 = vadd.f32 %v1718_v26, %v1563_v50 }
 0xefe   : > { %1724 = vadd.xlane.f32.xlu0 %v1723_v31 }
 0xeff   : > { %v1726_v30 = vsel %vm485_vm2, %v1722_v29, 0.0 }
 0xf00   : > { %1727 = vadd.xlane.f32.xlu1 %v1726_v30 }
 0xf8b   : > { %v1725_v32 = vpop.xlane.xlu0 %1724 }
 0xf8c   : > { %v1729_v33 = vmul.f32 0.03125, %v1725_v32 }
 0xf8d   : > { %v1728_v18 = vpop.xlane.xlu1 %1727 }
 0xf8e   : > { %v1731_v61 = vsub.f32 %v1721_v28, %v1729_v33  ;;  %v1730_v6 = vmul.f32 0.03125, %v1728_v18 }
 0xf90   : > { %v1732_v1 = vsub.f32 %v1722_v29, %v1730_v6  ;;  %v1733_v7 = vmul.f32 %v1731_v61, %v1731_v61 }
 0xf92   : > { %v1735_v2 = vsel %vm485_vm2, %v1733_v7, 0.0  ;;  %v1734_v34 = vmul.f32 %v1732_v1, %v1732_v1 }
 0xf93   : > { %1736 = vadd.xlane.f32.xlu0 %v1735_v2 }
 0xf94   : > { %v1738_v35 = vsel %vm485_vm2, %v1734_v34, 0.0 }
 0xf95   : > { %1739 = vadd.xlane.f32.xlu1 %v1738_v35 }
0x1020   : > { %v1737_v36 = vpop.xlane.xlu0 %1736 }
0x1021   : > { %v1741_v37 = vmul.f32 0.03125, %v1737_v36 }
0x1022   : > { %v1740_v38 = vpop.xlane.xlu1 %1739 }
0x1023   : > { %v1743_v39 = vadd.f32 1e-12, %v1741_v37  ;;  %v1742_v40 = vmul.f32 0.03125, %v1740_v38 }
0x1025   : > { %2287 = vrsqrt.f32 %v1743_v39  ;;  %v1744_v41 = vadd.f32 1e-12, %v1742_v40 }
0x1027   : > { %2289 = vrsqrt.f32 %v1744_v41 }
0x102f   : > { %v2288_v44 = vpop.eup %2287 }
0x1030   : > { %v1747_v46 = vmul.f32 %v2288_v44, %v1731_v61  ;;  %1764 = sbr.rel (%p1992_p5) target bundleno = 4153 (0x1039), region = 72 }
0x1031   : > { %v2290_v47 = vpop.eup %2289 }
0x1032   : > { %v1753_v48 = vmul.f32 %v1752_v43, %v1747_v46  ;;  %v1748_v49 = vmul.f32 %v2290_v47, %v1732_v1 }
0x1034   : > { %v1759_v50 = vadd.f32 %v1758_v45, %v1753_v48  ;;  %v1754_v51 = vmul.f32 %v1752_v43, %v1748_v49 }
0x1036   : > { %v1760_v52 = vadd.f32 %v1758_v45, %v1754_v51  ;;  %1765 = vst.msk [vmem:[#allocation2] sm:$0xff] (!%p1992_p5), %vm485_vm2, %v1759_v50 }
0x1038   : > { %1766 = vst.msk [vmem:[#allocation2 + $0x8] sm:$0xff] %vm485_vm2, %v1760_v52 }
0x1039 PF: > { %p1993_p6 = scmp.ne.s32.totalorder %s2392_s20, 1 }
0x103a   : > { %v2292_v10 = vld [vmem:[%s2680_s7] sm:$0xff] (!%p1993_p6)   ;;  %v2320_v12 = vmov (!%p1993_p6), 0.0   ;;  %v2293_v53 = vld [vmem:[%s2680_s7 + $0x8] sm:$0xff] (!%p1993_p6)   ;;  %vm2321_vm8 = vmmov (!%p1993_p6), 0   ;;  %v1772_v54 = vrot.slane (!%p1993_p6), %v1760_v52, 7  ;;  %vm1774_vm9 = vcmask (!%p1993_p6), 1040384  }
0x103b   : > { %1770 = sbr.rel (%p1993_p6) target bundleno = 4664 (0x1238), region = 76  ;;  %2187 = vmatprep.subr.bf16.mxu0 (!%p1993_p6), %v2320_v12  ;;  %2191 = vmatprep.mubr.msk.bf16.mxu0 (!%p1993_p6), %vm2321_vm8, %v2320_v12  ;;  %v1994_v57 = vld [vmem:[%s2681_s8] ss:$0 sm:$0xff] (!%p1993_p6)  ;;  %vm1852_vm10 = vcmask (!%p1993_p6), 254976   ;;  %v2322_v11 = vmov (!%p1993_p6), 0  }
0x103c   : > { %2188 = vmatpush3.bf16.msra.mxu0 (!%p1993_p6), %v2292_v10  ;;  %v1775_v55 = vsel (!%p1993_p6), %vm1774_vm9, %v1759_v50, %v1772_v54  ;;  %v1998_v0 = vld [vmem:[%s2682_s9] ss:$0 sm:$0xff] (!%p1993_p6)  ;;  %2291 = vset.pattern.permute.xlu0 (!%p1993_p6), %v2322_v11  ;;  %v1999_v14 = vld [vmem:[#allocation3] ss:$0 sm:$0xff] (!%p1993_p6) }
0x103d   : > { %2189 = vmatprep.subr.bf16.mxu0 (!%p1993_p6), %v2320_v12  ;;  %v1776_v56 = vpack.c.bf16 (!%p1993_p6), %v1775_v55, %v1775_v55 }
0x1040   : > { %2190 = vmatpush3.bf16.msra.mxu0 (!%p1993_p6), %v2293_v53 }
0x1043   : > { %2192 = vmatmul.mubr.msk.bf16.vlgmr.msra.gmra.mrb[0].mxu0 %vm485_vm2, %v1776_v56 }
0x1116   : > { %v1837_v58 = vpop.f32.mrb[0].mxu0 }
0x1117   : > { %v1838_v59 = vadd.f32 %v1994_v57, %v1837_v58  ;;  %v2193_v60 = vpop.f32.mrb[1].mxu0 }
0x1118   : > { %v1840_v62 = vpop.f32.mrb[2].mxu0 }
0x1119   : > { %2294 = vtanh.f32 %v1838_v59  ;;  %v2194_v63 = vpop.f32.mrb[3].mxu0 }
0x1123   : > { %v2295_v3 = vpop.eup %2294 }
0x1124   : > { %v1851_v8 = vmul.f32 %v2295_v3, %v1998_v0 }
0x1126   : > { %v1853_v9 = vsel %vm1852_vm10, %v1851_v8, 0.0 }
0x1127   : > { %1854 = vadd.xlane.f32.xlu0 %v1853_v9 }
0x11b4   : > { %v1855_v4 = vpop.xlane.xlu0 %1854 }
0x11b5   : > { %v1863_v15 = vadd.f32 %v1999_v14, %v1855_v4 }
0x11b7   : > { %1866 = vperm.xlu0 %2291, %v1863_v15  }
0x1236   : > { %v1867_v16 = vpop.permute.xlu0 %1866 }
0x1237   : > { %1869 = vst [vmem:[%s2684_s11] sm:$0x3] %v1867_v16 }
0x1238 PF: > { %s23_s19 = sadd.s32 1, %s2302_s19  }
0x1239   : > { %p20_p7 = scmp.ge.s32.totalorder %s23_s19, 4  }
0x123b   :  { %22 = sbr.rel (!%p20_p7) target bundleno = 3 (0x3), region = 114 }

</bundles_post_ra>
